<compile_context>
chip_gen: v7x
topology: tpu7x:2x2x1
jax: 0.10.0
libtpu: 0.0.40
codegen_flags: <defaults>
</compile_context>

<pallas_src>
import math

import jax
import jax.numpy as jnp
from jax import lax
from jax.experimental import pallas as pl
from jax.experimental.pallas import tpu as pltpu

# Scaled-down but structurally faithful hyperparameters.
DIM_MODEL = 32     # dim_model
N_HEAD = 8         # n_head (dim_model % n_head == 0)
DIM_FF = 64        # dim_feedforward
LN_EPS = 1e-5      # torch TransformerEncoderLayer default layer_norm_eps
# n_layers = 1 (module default) -> one encoder layer fused into the kernel.
# dropout = 0 -> identity, nothing to emit.

# Row indices of the packed (N_VEC_ROWS, VEC_W) vector-parameter slab.
(R_FREQ, R_INTW, R_LAT, R_BQK, R_BVO, R_BO,
 R_G1, R_BE1, R_B1, R_B2, R_G2, R_BE2) = range(12)
N_VEC_ROWS = 16            # padded to a multiple of 8 sublanes
VEC_W = 256                # bvo needs H*D = 256 lanes

# Weight slab layout (rows): [0:32) wvo | [32:64) wqk | [64:96) w1 | [96:160) w2
W_ROWS = 3 * DIM_MODEL + DIM_FF        # 160
W_COLS = 256


def _layer_norm(x, g, b):
    mu = jnp.mean(x, axis=-1, keepdims=True)
    var = jnp.mean((x - mu) ** 2, axis=-1, keepdims=True)
    return (x - mu) * lax.rsqrt(var + LN_EPS) * g + b


def spectrum_encoder_kernel(inp_ref, vec_ref, w_ref, out_ref):
    D = DIM_MODEL
    H = N_HEAD
    hd = D // H
    F = DIM_FF
    TB = inp_ref.shape[0]
    S = inp_ref.shape[1] // 3

    inp = inp_ref[...]                        # (TB, 3S): [m/z | intensity | bias]
    mz = inp[:, 0:S][:, :, None]              # (TB, S, 1)  (row 0 is a dummy 0)
    inten = inp[:, S:2 * S][:, :, None]       # (TB, S, 1)
    bias = inp[:, 2 * S:3 * S]                # (TB, S): 0 real key, -1e30 padded

    freq   = vec_ref[R_FREQ:R_FREQ + 1, 0:D]          # [sin_term | cos_term]
    int_w  = vec_ref[R_INTW:R_INTW + 1, 0:D]
    latent = vec_ref[R_LAT:R_LAT + 1,   0:D]
    bqk    = vec_ref[R_BQK:R_BQK + 1,   0:2 * D]
    bvo    = vec_ref[R_BVO:R_BVO + 1,   0:H * D]
    bo     = vec_ref[R_BO:R_BO + 1,     0:D]
    g1     = vec_ref[R_G1:R_G1 + 1,     0:D]
    be1    = vec_ref[R_BE1:R_BE1 + 1,   0:D]
    b1     = vec_ref[R_B1:R_B1 + 1,     0:F]
    b2     = vec_ref[R_B2:R_B2 + 1,     0:D]
    g2     = vec_ref[R_G2:R_G2 + 1,     0:D]
    be2    = vec_ref[R_BE2:R_BE2 + 1,   0:D]

    wvo = w_ref[0:D, :]                        # (D, H*D)  Wo folded into Wv
    wqk = w_ref[D:2 * D, 0:2 * D]              # (D, 2D)
    w1  = w_ref[2 * D:3 * D, 0:F]              # (D, F)
    w2  = w_ref[3 * D:3 * D + F, 0:D]          # (F, D)

    # ---- PeakEncoder: sinusoidal m/z encoding + linear intensity encoding ----
    # One divide over all D lanes + lane-iota select (no lane-boundary concat).
    arg = mz / freq[None]                                           # (TB, S, D)
    lane = lax.broadcasted_iota(jnp.int32, (1, 1, D), 2)
    enc = jnp.where(lane < D // 2, jnp.sin(arg), jnp.cos(arg)) + inten * int_w[None]
    # Sequence position 0 carries a dummy peak and is replaced by the latent
    # token via a tiny (1, S, 1) iota select.
    pos = lax.broadcasted_iota(jnp.int32, (1, S, 1), 1)
    x = jnp.where(pos == 0, latent[None], enc).reshape(TB * S, D)

    # ---- TransformerEncoderLayer (post-norm, ReLU, dropout = 0) ----
    qk = jnp.dot(x, wqk, preferred_element_type=jnp.float32) + bqk       # (TB*S, 2D)
    vprime = jnp.dot(x, wvo, preferred_element_type=jnp.float32) + bvo   # (TB*S, H*D)

    q3 = qk[:, 0:D].reshape(TB, S, D)
    k3 = qk[:, D:2 * D].reshape(TB, S, D)

    # Expand Q with a per-head 0/1 feature mask so a single full-D contraction
    # yields every head's scores (adding exact zeros; no per-head K=4 matmuls).
    lane_d = lax.broadcasted_iota(jnp.int32, (H, D), 1)
    head_h = lax.broadcasted_iota(jnp.int32, (H, D), 0)
    off = lane_d - head_h * hd
    hm = (off >= 0) & (off < hd)                                     # (H, D)
    q_exp = jnp.where(hm[None, :, None, :], q3[:, None, :, :], 0.0)  # (TB, H, S, D)
    q_exp = q_exp.reshape(TB, H * S, D)

    scale = 1.0 / math.sqrt(hd)
    s = jnp.einsum('bed,bkd->bek', q_exp, k3,
                   preferred_element_type=jnp.float32) * scale       # (TB, H*S, S)
    s = s + bias[:, None, :]                                         # key-pad bias
    # ONE softmax over every (batch, head, query) row.
    s = s - jnp.max(s, axis=-1, keepdims=True)
    probs = jnp.exp(s)
    probs = probs * pl.reciprocal(jnp.sum(probs, axis=-1, keepdims=True), approx=True)

    # Context: per-head (S,S)@(S,D) against the Wo-folded V'; summing the head
    # contributions IS the output projection (no separate out-proj matmul).
    attn = None
    for h in range(H):                         # static, tiny slices at 8/32 bounds
        ph = probs[:, h * S:(h + 1) * S, :]                           # (TB, S, S)
        vh = vprime[:, h * D:(h + 1) * D].reshape(TB, S, D)           # (TB, S, D)
        part = jnp.einsum('bqk,bkd->bqd', ph, vh,
                          preferred_element_type=jnp.float32)
        attn = part if attn is None else attn + part
    attn = attn.reshape(TB * S, D) + bo

    x = _layer_norm(x + attn, g1, be1)
    h1 = jnp.maximum(
        jnp.dot(x, w1, preferred_element_type=jnp.float32) + b1, 0.0)
    ff = jnp.dot(h1, w2, preferred_element_type=jnp.float32) + b2
    x = _layer_norm(x + ff, g2, be2)

    # ---- lane-dense epilogue: one unmasked (TB, S*D) store ----
    x3 = x.reshape(TB, S, D)
    out_ref[...] = jnp.concatenate([x3[:, i, :] for i in range(S)], axis=-1)


def _pack_vec_rows(rows):
    """Pack small 1-D parameter vectors into one (N_VEC_ROWS, VEC_W) f32 slab."""
    slab = jnp.zeros((N_VEC_ROWS, VEC_W), jnp.float32)
    for i, r in enumerate(rows):
        r = jnp.asarray(r, jnp.float32).reshape(-1)
        slab = slab.at[i, :r.shape[0]].set(r)
    return slab


def _pack_weight_slab(wvo, wqk, w1, w2):
    D, F = DIM_MODEL, DIM_FF
    slab = jnp.zeros((W_ROWS, W_COLS), jnp.float32)
    slab = slab.at[0:D, :].set(wvo.astype(jnp.float32))
    slab = slab.at[D:2 * D, 0:2 * D].set(wqk.astype(jnp.float32))
    slab = slab.at[2 * D:3 * D, 0:F].set(w1.astype(jnp.float32))
    slab = slab.at[3 * D:3 * D + F, 0:D].set(w2.astype(jnp.float32))
    return slab


def _pick_tb(B, tb_max=128):
    """Batch-block size: >=2 grid steps when possible (v7x megacore), 8-aligned."""
    if B <= 8:
        return B
    tb = min(tb_max, pl.cdiv(B, 2))
    return max(8, (tb // 8) * 8)


def spectrum_encoder(spectra, p, tb_max=128):
    """Returns (latent (B, P+1, D), mask (B, P+1) bool) like the torch module."""
    B, P, _ = spectra.shape
    S = P + 1
    D, H, F = DIM_MODEL, N_HEAD, DIM_FF
    hd = D // H

    spectra = spectra.astype(jnp.float32)
    # zeros = ~spectra.sum(dim=2).bool(); mask = cat([[False]]*B, zeros)
    zeros = spectra.sum(axis=2) == 0
    mask = jnp.concatenate([jnp.zeros((B, 1), dtype=bool), zeros], axis=1)   # (B, S)
    bias = jnp.where(mask, jnp.float32(-1e30), jnp.float32(0.0))             # (B, S)

    # Lane-contiguous per-spectrum inputs, dummy slot for the latent token.
    pad0 = jnp.zeros((B, 1), jnp.float32)
    mz = jnp.concatenate([pad0, spectra[:, :, 0]], axis=1)                   # (B, S)
    it = jnp.concatenate([pad0, spectra[:, :, 1]], axis=1)                   # (B, S)
    inp = jnp.concatenate([mz, it, bias], axis=1)                            # (B, 3S)

    # Fold the output projection into V (exact): Wvo = concat_h(Wv_h @ Wo_h).
    wv = p["wqkv"][:, 2 * D:]
    bv = p["bqkv"][:, 2 * D:]
    wvo = jnp.concatenate(
        [wv[:, h * hd:(h + 1) * hd] @ p["wo"][h * hd:(h + 1) * hd, :]
         for h in range(H)], axis=1)                                         # (D, H*D)
    bvo = jnp.concatenate(
        [bv[:, h * hd:(h + 1) * hd] @ p["wo"][h * hd:(h + 1) * hd, :]
         for h in range(H)], axis=1)                                         # (1, H*D)

    freq = jnp.concatenate([jnp.asarray(p["sin_term"]).reshape(-1),
                            jnp.asarray(p["cos_term"]).reshape(-1)])         # (D,)

    vec_slab = _pack_vec_rows([
        freq, p["int_w"], p["latent"], p["bqkv"][:, :2 * D], bvo, p["bo"],
        p["g1"], p["be1"], p["b1"], p["b2"], p["g2"], p["be2"]])
    w_slab = _pack_weight_slab(wvo, p["wqkv"][:, :2 * D], p["w1"], p["w2"])

    TB = _pick_tb(B, tb_max)
    Bp = pl.cdiv(B, TB) * TB
    if Bp != B:
        inp = jnp.pad(inp, ((0, Bp - B), (0, 0)))
    grid = Bp // TB

    out = pl.pallas_call(
        spectrum_encoder_kernel,
        out_shape=jax.ShapeDtypeStruct((Bp, S * D), jnp.float32),
        grid_spec=pltpu.PrefetchScalarGridSpec(
            num_scalar_prefetch=0,
            grid=(grid,),
            in_specs=[
                pl.BlockSpec((TB, 3 * S), lambda b: (b, 0)),
                pl.BlockSpec(vec_slab.shape, lambda b: (0, 0)),
                pl.BlockSpec(w_slab.shape, lambda b: (0, 0)),
            ],
            out_specs=pl.BlockSpec((TB, S * D), lambda b: (b, 0)),
        ),
        compiler_params=pltpu.CompilerParams(
            dimension_semantics=("parallel",),
            vmem_limit_bytes=32 * 1024 * 1024),
    )(inp, vec_slab, w_slab)

    return out[:B].reshape(B, S, D), mask


def init_params(key):
    """Deterministic synthetic parameters (shapes implied by the module __init__)."""
    D, F = DIM_MODEL, DIM_FF
    n_sin = D // 2
    n_cos = D - n_sin
    # MassEncoder terms (min_wavelength=0.001, max_wavelength=10000)
    base = 0.001 / (2.0 * math.pi)
    scale = 10000.0 / 0.001
    sin_term = (base * scale ** (jnp.arange(n_sin, dtype=jnp.float32) / (n_sin - 1)))[None, :]
    cos_term = (base * scale ** (jnp.arange(n_cos, dtype=jnp.float32) / (n_cos - 1)))[None, :]

    ks = jax.random.split(key, 8)

    def rnd(k, shape, s=0.1):
        return (s * jax.random.normal(k, shape)).astype(jnp.float32)

    return dict(
        sin_term=sin_term, cos_term=cos_term,
        int_w=rnd(ks[0], (1, D)),                 # Linear(1, D, bias=False) intensity enc
        latent=rnd(ks[1], (1, D), 1.0),           # latent_spectrum (1, 1, D) -> (1, D)
        wqkv=rnd(ks[2], (D, 3 * D)),              # in_proj_weight.T
        bqkv=rnd(ks[3], (1, 3 * D)),              # in_proj_bias
        wo=rnd(ks[4], (D, D)),                    # out_proj.weight.T
        bo=jnp.zeros((1, D), jnp.float32),        # out_proj.bias
        g1=jnp.ones((1, D), jnp.float32),
        be1=jnp.zeros((1, D), jnp.float32),
        w1=rnd(ks[5], (D, F)),                    # linear1.weight.T
        b1=rnd(ks[6], (1, F)),
        w2=rnd(ks[7], (F, D)),                    # linear2.weight.T
        b2=jnp.zeros((1, D), jnp.float32),
        g2=jnp.ones((1, D), jnp.float32),
        be2=jnp.zeros((1, D), jnp.float32),
    )


def reference_forward(spectra, p):
    """Pure-JAX reference of the same forward pass (for a correctness check)."""
    B, P, _ = spectra.shape
    D, H = DIM_MODEL, N_HEAD
    hd = D // H

    mz = spectra[..., 0:1]
    inten = spectra[..., 1:2]
    enc = jnp.concatenate(
        [jnp.sin(mz / p["sin_term"]), jnp.cos(mz / p["cos_term"])], axis=-1
    ) + inten * p["int_w"]
    x = jnp.concatenate([jnp.broadcast_to(p["latent"][None], (B, 1, D)), enc], axis=1)

    zeros = spectra.sum(axis=2) == 0
    mask = jnp.concatenate([jnp.zeros((B, 1), dtype=bool), zeros], axis=1)
    bias = jnp.where(mask, -1e30, 0.0)[:, None, None, :]

    qkv = x @ p["wqkv"] + p["bqkv"]
    q, k, v = qkv[..., :D], qkv[..., D:2 * D], qkv[..., 2 * D:]

    def split(t):
        return t.reshape(B, -1, H, hd).transpose(0, 2, 1, 3)

    q, k, v = split(q), split(k), split(v)
    s = q @ k.transpose(0, 1, 3, 2) / math.sqrt(hd) + bias
    a = jax.nn.softmax(s, axis=-1)
    ctx = (a @ v).transpose(0, 2, 1, 3).reshape(B, -1, D)
    attn = ctx @ p["wo"] + p["bo"]

    def ln(y, g, b):
        mu = y.mean(-1, keepdims=True)
        var = ((y - mu) ** 2).mean(-1, keepdims=True)
        return (y - mu) / jnp.sqrt(var + LN_EPS) * g + b

    x = ln(x + attn, p["g1"], p["be1"])
    ff = jnp.maximum(x @ p["w1"] + p["b1"], 0.0) @ p["w2"] + p["b2"]
    x = ln(x + ff, p["g2"], p["be2"])
    return x, mask


if __name__ == "__main__":
    key = jax.random.PRNGKey(0)
    k_spec, k_param = jax.random.split(key)

    B, P = 2, 7                                  # (n_spectra, n_peaks); S = P + 1 = 8
    mz = jax.random.uniform(k_spec, (B, P, 1), minval=50.0, maxval=2000.0)
    inten = jax.random.uniform(jax.random.fold_in(k_spec, 1), (B, P, 1),
                               minval=0.1, maxval=1.0)
    spectra = jnp.concatenate([mz, inten], axis=-1).astype(jnp.float32)
    # Zero-pad the last 2 peaks of the second spectrum (like real padded batches).
    pad = jnp.arange(P)[None, :] >= jnp.array([P, P - 2])[:, None]
    spectra = jnp.where(pad[..., None], 0.0, spectra)

    params = init_params(k_param)

    out, mask = spectrum_encoder(spectra, params)
    out = jax.block_until_ready(out)

    ref_out, ref_mask = reference_forward(spectra, params)
    assert out.shape == (B, P + 1, DIM_MODEL)
    assert mask.shape == (B, P + 1) and mask.dtype == jnp.bool_
    assert bool(jnp.all(mask == ref_mask))
    max_err = float(jnp.max(jnp.abs(out - ref_out)))
    # 2e-3 tolerance: approximate (EUP) reciprocal in the softmax denominator.
    assert max_err < 2e-3, f"max abs error {max_err}"

    print("KERNEL_OK")
</pallas_src>

<mosaic_0001>
module attributes {stable_mosaic.version = 11 : i64} {
  func.func @spectrum_encoder_kernel(%arg0: i32, %arg1: memref<2x24xf32, #tpu.memory_space<vmem>>, %arg2: memref<16x256xf32, #tpu.memory_space<vmem>>, %arg3: memref<160x256xf32, #tpu.memory_space<vmem>>, %arg4: memref<2x256xf32, #tpu.memory_space<vmem>>) attributes {dimension_semantics = [#tpu.dimension_semantics<parallel>], iteration_bounds = array<i64: 1>, scalar_prefetch = 0 : i64, scratch_operands = 0 : i64, tpu.core_type = #tpu.core_type<tc>, window_params = [{transform_indices = @transform_0, window_bounds = array<i64: 2, 24>}, {pipeline_mode = #tpu.pipeline_mode<synchronous>, transform_indices = @transform_1, window_bounds = array<i64: 16, 256>}, {pipeline_mode = #tpu.pipeline_mode<synchronous>, transform_indices = @transform_2, window_bounds = array<i64: 160, 256>}, {transform_indices = @transform_3, window_bounds = array<i64: 2, 256>}]} {
    %c0 = arith.constant 0 : index
    %c0_0 = arith.constant 0 : index
    %0 = vector.load %arg1[%c0, %c0_0] : memref<2x24xf32, #tpu.memory_space<vmem>>, vector<2x24xf32>
    %1 = vector.extract_strided_slice %0 {offsets = [0, 0], sizes = [2, 8], strides = [1, 1]} : vector<2x24xf32> to vector<2x8xf32>
    %2 = vector.shape_cast %1 : vector<2x8xf32> to vector<2x8x1xf32>
    %3 = vector.extract_strided_slice %0 {offsets = [0, 8], sizes = [2, 8], strides = [1, 1]} : vector<2x24xf32> to vector<2x8xf32>
    %4 = vector.shape_cast %3 : vector<2x8xf32> to vector<2x8x1xf32>
    %5 = vector.extract_strided_slice %0 {offsets = [0, 16], sizes = [2, 8], strides = [1, 1]} : vector<2x24xf32> to vector<2x8xf32>
    %c0_1 = arith.constant 0 : index
    %c0_2 = arith.constant 0 : index
    %6 = vector.load %arg2[%c0_1, %c0_2] : memref<16x256xf32, #tpu.memory_space<vmem>>, vector<1x32xf32>
    %c1 = arith.constant 1 : index
    %c0_3 = arith.constant 0 : index
    %7 = vector.load %arg2[%c1, %c0_3] : memref<16x256xf32, #tpu.memory_space<vmem>>, vector<1x32xf32>
    %c2 = arith.constant 2 : index
    %c0_4 = arith.constant 0 : index
    %8 = vector.load %arg2[%c2, %c0_4] : memref<16x256xf32, #tpu.memory_space<vmem>>, vector<1x32xf32>
    %c3 = arith.constant 3 : index
    %c0_5 = arith.constant 0 : index
    %9 = vector.load %arg2[%c3, %c0_5] : memref<16x256xf32, #tpu.memory_space<vmem>>, vector<1x64xf32>
    %c4 = arith.constant 4 : index
    %c0_6 = arith.constant 0 : index
    %10 = vector.load %arg2[%c4, %c0_6] : memref<16x256xf32, #tpu.memory_space<vmem>>, vector<1x256xf32>
    %c5 = arith.constant 5 : index
    %c0_7 = arith.constant 0 : index
    %11 = vector.load %arg2[%c5, %c0_7] : memref<16x256xf32, #tpu.memory_space<vmem>>, vector<1x32xf32>
    %c6 = arith.constant 6 : index
    %c0_8 = arith.constant 0 : index
    %12 = vector.load %arg2[%c6, %c0_8] : memref<16x256xf32, #tpu.memory_space<vmem>>, vector<1x32xf32>
    %c7 = arith.constant 7 : index
    %c0_9 = arith.constant 0 : index
    %13 = vector.load %arg2[%c7, %c0_9] : memref<16x256xf32, #tpu.memory_space<vmem>>, vector<1x32xf32>
    %c8 = arith.constant 8 : index
    %c0_10 = arith.constant 0 : index
    %14 = vector.load %arg2[%c8, %c0_10] : memref<16x256xf32, #tpu.memory_space<vmem>>, vector<1x64xf32>
    %c9 = arith.constant 9 : index
    %c0_11 = arith.constant 0 : index
    %15 = vector.load %arg2[%c9, %c0_11] : memref<16x256xf32, #tpu.memory_space<vmem>>, vector<1x32xf32>
    %c10 = arith.constant 10 : index
    %c0_12 = arith.constant 0 : index
    %16 = vector.load %arg2[%c10, %c0_12] : memref<16x256xf32, #tpu.memory_space<vmem>>, vector<1x32xf32>
    %c11 = arith.constant 11 : index
    %c0_13 = arith.constant 0 : index
    %17 = vector.load %arg2[%c11, %c0_13] : memref<16x256xf32, #tpu.memory_space<vmem>>, vector<1x32xf32>
    %c0_14 = arith.constant 0 : index
    %c0_15 = arith.constant 0 : index
    %18 = vector.load %arg3[%c0_14, %c0_15] : memref<160x256xf32, #tpu.memory_space<vmem>>, vector<32x256xf32>
    %c32 = arith.constant 32 : index
    %c0_16 = arith.constant 0 : index
    %19 = vector.load %arg3[%c32, %c0_16] : memref<160x256xf32, #tpu.memory_space<vmem>>, vector<32x64xf32>
    %c64 = arith.constant 64 : index
    %c0_17 = arith.constant 0 : index
    %20 = vector.load %arg3[%c64, %c0_17] : memref<160x256xf32, #tpu.memory_space<vmem>>, vector<32x64xf32>
    %c96 = arith.constant 96 : index
    %c0_18 = arith.constant 0 : index
    %21 = vector.load %arg3[%c96, %c0_18] : memref<160x256xf32, #tpu.memory_space<vmem>>, vector<64x32xf32>
    %22 = vector.shape_cast %6 : vector<1x32xf32> to vector<1x1x32xf32>
    %23 = vector.broadcast %2 : vector<2x8x1xf32> to vector<2x8x32xf32>
    %24 = vector.broadcast %22 : vector<1x1x32xf32> to vector<2x8x32xf32>
    %25 = arith.divf %23, %24 : vector<2x8x32xf32>
    %26 = tpu.iota {dimensions = array<i32: 2>} : vector<1x1x32xi32>
    %c16_i32 = arith.constant 16 : i32
    %27 = vector.broadcast %c16_i32 : i32 to vector<1x1x32xi32>
    %28 = arith.cmpi slt, %26, %27 : vector<1x1x32xi32>
    %29 = math.sin %25 : vector<2x8x32xf32>
    %30 = math.cos %25 : vector<2x8x32xf32>
    %31 = vector.shape_cast %28 : vector<1x1x32xi1> to vector<1x1x32xi1>
    %32 = vector.broadcast %31 : vector<1x1x32xi1> to vector<2x8x32xi1>
    %33 = arith.select %32, %29, %30 : vector<2x8x32xi1>, vector<2x8x32xf32>
    %34 = vector.shape_cast %7 : vector<1x32xf32> to vector<1x1x32xf32>
    %35 = vector.broadcast %4 : vector<2x8x1xf32> to vector<2x8x32xf32>
    %36 = vector.broadcast %34 : vector<1x1x32xf32> to vector<2x8x32xf32>
    %37 = arith.mulf %35, %36 : vector<2x8x32xf32>
    %38 = arith.addf %33, %37 : vector<2x8x32xf32>
    %39 = tpu.iota {dimensions = array<i32: 1>} : vector<1x8x1xi32>
    %c0_i32 = arith.constant 0 : i32
    %40 = vector.broadcast %c0_i32 : i32 to vector<1x8x1xi32>
    %41 = arith.cmpi eq, %39, %40 : vector<1x8x1xi32>
    %42 = vector.shape_cast %8 : vector<1x32xf32> to vector<1x1x32xf32>
    %43 = vector.shape_cast %41 : vector<1x8x1xi1> to vector<1x8x1xi1>
    %44 = vector.broadcast %43 : vector<1x8x1xi1> to vector<2x8x32xi1>
    %45 = vector.shape_cast %42 : vector<1x1x32xf32> to vector<1x1x32xf32>
    %46 = vector.broadcast %45 : vector<1x1x32xf32> to vector<2x8x32xf32>
    %47 = arith.select %44, %46, %38 : vector<2x8x32xi1>, vector<2x8x32xf32>
    %48 = vector.shape_cast %47 : vector<2x8x32xf32> to vector<16x32xf32>
    %cst = arith.constant dense<0.000000e+00> : vector<16x64xf32>
    %49 = tpu.matmul %48, %19, %cst {dimension_numbers = #tpu.dot_dimension_numbers<[1], [0], [0], [1], [0, 0, 1, 1], [], []>} : vector<16x32xf32>, vector<32x64xf32>, vector<16x64xf32> -> vector<16x64xf32>
    %50 = vector.broadcast %9 : vector<1x64xf32> to vector<16x64xf32>
    %51 = arith.addf %49, %50 : vector<16x64xf32>
    %cst_19 = arith.constant dense<0.000000e+00> : vector<16x256xf32>
    %52 = tpu.matmul %48, %18, %cst_19 {dimension_numbers = #tpu.dot_dimension_numbers<[1], [0], [0], [1], [0, 0, 1, 1], [], []>} : vector<16x32xf32>, vector<32x256xf32>, vector<16x256xf32> -> vector<16x256xf32>
    %53 = vector.broadcast %10 : vector<1x256xf32> to vector<16x256xf32>
    %54 = arith.addf %52, %53 : vector<16x256xf32>
    %55 = vector.extract_strided_slice %51 {offsets = [0, 0], sizes = [16, 32], strides = [1, 1]} : vector<16x64xf32> to vector<16x32xf32>
    %56 = vector.shape_cast %55 : vector<16x32xf32> to vector<2x8x32xf32>
    %57 = vector.extract_strided_slice %51 {offsets = [0, 32], sizes = [16, 32], strides = [1, 1]} : vector<16x64xf32> to vector<16x32xf32>
    %58 = vector.shape_cast %57 : vector<16x32xf32> to vector<2x8x32xf32>
    %59 = tpu.iota {dimensions = array<i32: 1>} : vector<8x32xi32>
    %60 = tpu.iota {dimensions = array<i32: 0>} : vector<8x32xi32>
    %c4_i32 = arith.constant 4 : i32
    %61 = vector.broadcast %c4_i32 : i32 to vector<8x32xi32>
    %62 = arith.muli %60, %61 : vector<8x32xi32>
    %63 = arith.subi %59, %62 : vector<8x32xi32>
    %c0_i32_20 = arith.constant 0 : i32
    %64 = vector.broadcast %c0_i32_20 : i32 to vector<8x32xi32>
    %65 = arith.cmpi sge, %63, %64 : vector<8x32xi32>
    %c4_i32_21 = arith.constant 4 : i32
    %66 = vector.broadcast %c4_i32_21 : i32 to vector<8x32xi32>
    %67 = arith.cmpi slt, %63, %66 : vector<8x32xi32>
    %68 = arith.andi %65, %67 : vector<8x32xi1>
    %69 = vector.shape_cast %68 : vector<8x32xi1> to vector<1x8x1x32xi1>
    %70 = vector.shape_cast %56 : vector<2x8x32xf32> to vector<2x1x8x32xf32>
    %cst_22 = arith.constant 0.000000e+00 : f32
    %71 = vector.shape_cast %69 : vector<1x8x1x32xi1> to vector<1x8x1x32xi1>
    %72 = vector.broadcast %71 : vector<1x8x1x32xi1> to vector<2x8x8x32xi1>
    %73 = vector.shape_cast %70 : vector<2x1x8x32xf32> to vector<2x1x8x32xf32>
    %74 = vector.broadcast %73 : vector<2x1x8x32xf32> to vector<2x8x8x32xf32>
    %75 = vector.broadcast %cst_22 : f32 to vector<2x8x8x32xf32>
    %76 = arith.select %72, %74, %75 : vector<2x8x8x32xi1>, vector<2x8x8x32xf32>
    %77 = vector.shape_cast %76 : vector<2x8x8x32xf32> to vector<2x64x32xf32>
    "tpu.trace_start"() <{level = 10 : i32, message = "bed,bkd->bek"}> : () -> ()
    %cst_23 = arith.constant dense<0.000000e+00> : vector<2x64x8xf32>
    %78 = tpu.matmul %77, %58, %cst_23 {dimension_numbers = #tpu.dot_dimension_numbers<[2], [2], [1], [1], [0, 0, 0, 1, 1, 1], [0], [0]>} : vector<2x64x32xf32>, vector<2x8x32xf32>, vector<2x64x8xf32> -> vector<2x64x8xf32>
    "tpu.trace_stop"() : () -> ()
    %cst_24 = arith.constant 5.000000e-01 : f32
    %79 = vector.broadcast %cst_24 : f32 to vector<2x64x8xf32>
    %80 = arith.mulf %78, %79 : vector<2x64x8xf32>
    %81 = vector.shape_cast %5 : vector<2x8xf32> to vector<2x1x8xf32>
    %82 = vector.broadcast %81 : vector<2x1x8xf32> to vector<2x64x8xf32>
    %83 = arith.addf %80, %82 : vector<2x64x8xf32>
    %cst_25 = arith.constant dense<0xFF800000> : vector<2x64xf32>
    %84 = vector.multi_reduction <maximumf>, %83, %cst_25 [2] : vector<2x64x8xf32> to vector<2x64xf32>
    %85 = vector.shape_cast %84 : vector<2x64xf32> to vector<2x64x1xf32>
    %86 = vector.broadcast %85 : vector<2x64x1xf32> to vector<2x64x8xf32>
    %87 = arith.subf %83, %86 : vector<2x64x8xf32>
    %88 = math.exp %87 : vector<2x64x8xf32>
    %cst_26 = arith.constant dense<0.000000e+00> : vector<2x64xf32>
    %89 = vector.multi_reduction <add>, %88, %cst_26 [2] : vector<2x64x8xf32> to vector<2x64xf32>
    %90 = vector.shape_cast %89 : vector<2x64xf32> to vector<2x64x1xf32>
    %91 = tpu.reciprocal %90 {approx = true} : vector<2x64x1xf32> -> vector<2x64x1xf32>
    %92 = vector.broadcast %91 : vector<2x64x1xf32> to vector<2x64x8xf32>
    %93 = arith.mulf %88, %92 : vector<2x64x8xf32>
    %94 = vector.extract_strided_slice %93 {offsets = [0, 0, 0], sizes = [2, 8, 8], strides = [1, 1, 1]} : vector<2x64x8xf32> to vector<2x8x8xf32>
    %95 = vector.extract_strided_slice %54 {offsets = [0, 0], sizes = [16, 32], strides = [1, 1]} : vector<16x256xf32> to vector<16x32xf32>
    %96 = vector.shape_cast %95 : vector<16x32xf32> to vector<2x8x32xf32>
    "tpu.trace_start"() <{level = 10 : i32, message = "bqk,bkd->bqd"}> : () -> ()
    %cst_27 = arith.constant dense<0.000000e+00> : vector<2x8x32xf32>
    %97 = tpu.matmul %94, %96, %cst_27 {dimension_numbers = #tpu.dot_dimension_numbers<[2], [1], [1], [2], [0, 0, 0, 1, 1, 2], [0], [0]>} : vector<2x8x8xf32>, vector<2x8x32xf32>, vector<2x8x32xf32> -> vector<2x8x32xf32>
    "tpu.trace_stop"() : () -> ()
    %98 = vector.extract_strided_slice %93 {offsets = [0, 8, 0], sizes = [2, 8, 8], strides = [1, 1, 1]} : vector<2x64x8xf32> to vector<2x8x8xf32>
    %99 = vector.extract_strided_slice %54 {offsets = [0, 32], sizes = [16, 32], strides = [1, 1]} : vector<16x256xf32> to vector<16x32xf32>
    %100 = vector.shape_cast %99 : vector<16x32xf32> to vector<2x8x32xf32>
    "tpu.trace_start"() <{level = 10 : i32, message = "bqk,bkd->bqd"}> : () -> ()
    %cst_28 = arith.constant dense<0.000000e+00> : vector<2x8x32xf32>
    %101 = tpu.matmul %98, %100, %cst_28 {dimension_numbers = #tpu.dot_dimension_numbers<[2], [1], [1], [2], [0, 0, 0, 1, 1, 2], [0], [0]>} : vector<2x8x8xf32>, vector<2x8x32xf32>, vector<2x8x32xf32> -> vector<2x8x32xf32>
    "tpu.trace_stop"() : () -> ()
    %102 = arith.addf %97, %101 : vector<2x8x32xf32>
    %103 = vector.extract_strided_slice %93 {offsets = [0, 16, 0], sizes = [2, 8, 8], strides = [1, 1, 1]} : vector<2x64x8xf32> to vector<2x8x8xf32>
    %104 = vector.extract_strided_slice %54 {offsets = [0, 64], sizes = [16, 32], strides = [1, 1]} : vector<16x256xf32> to vector<16x32xf32>
    %105 = vector.shape_cast %104 : vector<16x32xf32> to vector<2x8x32xf32>
    "tpu.trace_start"() <{level = 10 : i32, message = "bqk,bkd->bqd"}> : () -> ()
    %cst_29 = arith.constant dense<0.000000e+00> : vector<2x8x32xf32>
    %106 = tpu.matmul %103, %105, %cst_29 {dimension_numbers = #tpu.dot_dimension_numbers<[2], [1], [1], [2], [0, 0, 0, 1, 1, 2], [0], [0]>} : vector<2x8x8xf32>, vector<2x8x32xf32>, vector<2x8x32xf32> -> vector<2x8x32xf32>
    "tpu.trace_stop"() : () -> ()
    %107 = arith.addf %102, %106 : vector<2x8x32xf32>
    %108 = vector.extract_strided_slice %93 {offsets = [0, 24, 0], sizes = [2, 8, 8], strides = [1, 1, 1]} : vector<2x64x8xf32> to vector<2x8x8xf32>
    %109 = vector.extract_strided_slice %54 {offsets = [0, 96], sizes = [16, 32], strides = [1, 1]} : vector<16x256xf32> to vector<16x32xf32>
    %110 = vector.shape_cast %109 : vector<16x32xf32> to vector<2x8x32xf32>
    "tpu.trace_start"() <{level = 10 : i32, message = "bqk,bkd->bqd"}> : () -> ()
    %cst_30 = arith.constant dense<0.000000e+00> : vector<2x8x32xf32>
    %111 = tpu.matmul %108, %110, %cst_30 {dimension_numbers = #tpu.dot_dimension_numbers<[2], [1], [1], [2], [0, 0, 0, 1, 1, 2], [0], [0]>} : vector<2x8x8xf32>, vector<2x8x32xf32>, vector<2x8x32xf32> -> vector<2x8x32xf32>
    "tpu.trace_stop"() : () -> ()
    %112 = arith.addf %107, %111 : vector<2x8x32xf32>
    %113 = vector.extract_strided_slice %93 {offsets = [0, 32, 0], sizes = [2, 8, 8], strides = [1, 1, 1]} : vector<2x64x8xf32> to vector<2x8x8xf32>
    %114 = vector.extract_strided_slice %54 {offsets = [0, 128], sizes = [16, 32], strides = [1, 1]} : vector<16x256xf32> to vector<16x32xf32>
    %115 = vector.shape_cast %114 : vector<16x32xf32> to vector<2x8x32xf32>
    "tpu.trace_start"() <{level = 10 : i32, message = "bqk,bkd->bqd"}> : () -> ()
    %cst_31 = arith.constant dense<0.000000e+00> : vector<2x8x32xf32>
    %116 = tpu.matmul %113, %115, %cst_31 {dimension_numbers = #tpu.dot_dimension_numbers<[2], [1], [1], [2], [0, 0, 0, 1, 1, 2], [0], [0]>} : vector<2x8x8xf32>, vector<2x8x32xf32>, vector<2x8x32xf32> -> vector<2x8x32xf32>
    "tpu.trace_stop"() : () -> ()
    %117 = arith.addf %112, %116 : vector<2x8x32xf32>
    %118 = vector.extract_strided_slice %93 {offsets = [0, 40, 0], sizes = [2, 8, 8], strides = [1, 1, 1]} : vector<2x64x8xf32> to vector<2x8x8xf32>
    %119 = vector.extract_strided_slice %54 {offsets = [0, 160], sizes = [16, 32], strides = [1, 1]} : vector<16x256xf32> to vector<16x32xf32>
    %120 = vector.shape_cast %119 : vector<16x32xf32> to vector<2x8x32xf32>
    "tpu.trace_start"() <{level = 10 : i32, message = "bqk,bkd->bqd"}> : () -> ()
    %cst_32 = arith.constant dense<0.000000e+00> : vector<2x8x32xf32>
    %121 = tpu.matmul %118, %120, %cst_32 {dimension_numbers = #tpu.dot_dimension_numbers<[2], [1], [1], [2], [0, 0, 0, 1, 1, 2], [0], [0]>} : vector<2x8x8xf32>, vector<2x8x32xf32>, vector<2x8x32xf32> -> vector<2x8x32xf32>
    "tpu.trace_stop"() : () -> ()
    %122 = arith.addf %117, %121 : vector<2x8x32xf32>
    %123 = vector.extract_strided_slice %93 {offsets = [0, 48, 0], sizes = [2, 8, 8], strides = [1, 1, 1]} : vector<2x64x8xf32> to vector<2x8x8xf32>
    %124 = vector.extract_strided_slice %54 {offsets = [0, 192], sizes = [16, 32], strides = [1, 1]} : vector<16x256xf32> to vector<16x32xf32>
    %125 = vector.shape_cast %124 : vector<16x32xf32> to vector<2x8x32xf32>
    "tpu.trace_start"() <{level = 10 : i32, message = "bqk,bkd->bqd"}> : () -> ()
    %cst_33 = arith.constant dense<0.000000e+00> : vector<2x8x32xf32>
    %126 = tpu.matmul %123, %125, %cst_33 {dimension_numbers = #tpu.dot_dimension_numbers<[2], [1], [1], [2], [0, 0, 0, 1, 1, 2], [0], [0]>} : vector<2x8x8xf32>, vector<2x8x32xf32>, vector<2x8x32xf32> -> vector<2x8x32xf32>
    "tpu.trace_stop"() : () -> ()
    %127 = arith.addf %122, %126 : vector<2x8x32xf32>
    %128 = vector.extract_strided_slice %93 {offsets = [0, 56, 0], sizes = [2, 8, 8], strides = [1, 1, 1]} : vector<2x64x8xf32> to vector<2x8x8xf32>
    %129 = vector.extract_strided_slice %54 {offsets = [0, 224], sizes = [16, 32], strides = [1, 1]} : vector<16x256xf32> to vector<16x32xf32>
    %130 = vector.shape_cast %129 : vector<16x32xf32> to vector<2x8x32xf32>
    "tpu.trace_start"() <{level = 10 : i32, message = "bqk,bkd->bqd"}> : () -> ()
    %cst_34 = arith.constant dense<0.000000e+00> : vector<2x8x32xf32>
    %131 = tpu.matmul %128, %130, %cst_34 {dimension_numbers = #tpu.dot_dimension_numbers<[2], [1], [1], [2], [0, 0, 0, 1, 1, 2], [0], [0]>} : vector<2x8x8xf32>, vector<2x8x32xf32>, vector<2x8x32xf32> -> vector<2x8x32xf32>
    "tpu.trace_stop"() : () -> ()
    %132 = arith.addf %127, %131 : vector<2x8x32xf32>
    %133 = vector.shape_cast %132 : vector<2x8x32xf32> to vector<16x32xf32>
    %134 = vector.broadcast %11 : vector<1x32xf32> to vector<16x32xf32>
    %135 = arith.addf %133, %134 : vector<16x32xf32>
    %136 = arith.addf %48, %135 : vector<16x32xf32>
    %cst_35 = arith.constant dense<0.000000e+00> : vector<16xf32>
    %137 = vector.multi_reduction <add>, %136, %cst_35 [1] : vector<16x32xf32> to vector<16xf32>
    %138 = vector.shape_cast %137 : vector<16xf32> to vector<16x1xf32>
    %cst_36 = arith.constant 3.200000e+01 : f32
    %139 = vector.broadcast %cst_36 : f32 to vector<16x1xf32>
    %140 = arith.divf %138, %139 : vector<16x1xf32>
    %141 = vector.broadcast %140 : vector<16x1xf32> to vector<16x32xf32>
    %142 = arith.subf %136, %141 : vector<16x32xf32>
    %143 = arith.mulf %142, %142 : vector<16x32xf32>
    %cst_37 = arith.constant dense<0.000000e+00> : vector<16xf32>
    %144 = vector.multi_reduction <add>, %143, %cst_37 [1] : vector<16x32xf32> to vector<16xf32>
    %145 = vector.shape_cast %144 : vector<16xf32> to vector<16x1xf32>
    %cst_38 = arith.constant 3.200000e+01 : f32
    %146 = vector.broadcast %cst_38 : f32 to vector<16x1xf32>
    %147 = arith.divf %145, %146 : vector<16x1xf32>
    %148 = vector.broadcast %140 : vector<16x1xf32> to vector<16x32xf32>
    %149 = arith.subf %136, %148 : vector<16x32xf32>
    %cst_39 = arith.constant 9.99999974E-6 : f32
    %150 = vector.broadcast %cst_39 : f32 to vector<16x1xf32>
    %151 = arith.addf %147, %150 : vector<16x1xf32>
    %152 = math.rsqrt %151 : vector<16x1xf32>
    %153 = vector.broadcast %152 : vector<16x1xf32> to vector<16x32xf32>
    %154 = arith.mulf %149, %153 : vector<16x32xf32>
    %155 = vector.broadcast %12 : vector<1x32xf32> to vector<16x32xf32>
    %156 = arith.mulf %154, %155 : vector<16x32xf32>
    %157 = vector.broadcast %13 : vector<1x32xf32> to vector<16x32xf32>
    %158 = arith.addf %156, %157 : vector<16x32xf32>
    %cst_40 = arith.constant dense<0.000000e+00> : vector<16x64xf32>
    %159 = tpu.matmul %158, %20, %cst_40 {dimension_numbers = #tpu.dot_dimension_numbers<[1], [0], [0], [1], [0, 0, 1, 1], [], []>} : vector<16x32xf32>, vector<32x64xf32>, vector<16x64xf32> -> vector<16x64xf32>
    %160 = vector.broadcast %14 : vector<1x64xf32> to vector<16x64xf32>
    %161 = arith.addf %159, %160 : vector<16x64xf32>
    %cst_41 = arith.constant 0.000000e+00 : f32
    %162 = vector.broadcast %cst_41 : f32 to vector<16x64xf32>
    %163 = arith.maximumf %161, %162 : vector<16x64xf32>
    %cst_42 = arith.constant dense<0.000000e+00> : vector<16x32xf32>
    %164 = tpu.matmul %163, %21, %cst_42 {dimension_numbers = #tpu.dot_dimension_numbers<[1], [0], [0], [1], [0, 0, 1, 1], [], []>} : vector<16x64xf32>, vector<64x32xf32>, vector<16x32xf32> -> vector<16x32xf32>
    %165 = vector.broadcast %15 : vector<1x32xf32> to vector<16x32xf32>
    %166 = arith.addf %164, %165 : vector<16x32xf32>
    %167 = arith.addf %158, %166 : vector<16x32xf32>
    %cst_43 = arith.constant dense<0.000000e+00> : vector<16xf32>
    %168 = vector.multi_reduction <add>, %167, %cst_43 [1] : vector<16x32xf32> to vector<16xf32>
    %169 = vector.shape_cast %168 : vector<16xf32> to vector<16x1xf32>
    %cst_44 = arith.constant 3.200000e+01 : f32
    %170 = vector.broadcast %cst_44 : f32 to vector<16x1xf32>
    %171 = arith.divf %169, %170 : vector<16x1xf32>
    %172 = vector.broadcast %171 : vector<16x1xf32> to vector<16x32xf32>
    %173 = arith.subf %167, %172 : vector<16x32xf32>
    %174 = arith.mulf %173, %173 : vector<16x32xf32>
    %cst_45 = arith.constant dense<0.000000e+00> : vector<16xf32>
    %175 = vector.multi_reduction <add>, %174, %cst_45 [1] : vector<16x32xf32> to vector<16xf32>
    %176 = vector.shape_cast %175 : vector<16xf32> to vector<16x1xf32>
    %cst_46 = arith.constant 3.200000e+01 : f32
    %177 = vector.broadcast %cst_46 : f32 to vector<16x1xf32>
    %178 = arith.divf %176, %177 : vector<16x1xf32>
    %179 = vector.broadcast %171 : vector<16x1xf32> to vector<16x32xf32>
    %180 = arith.subf %167, %179 : vector<16x32xf32>
    %cst_47 = arith.constant 9.99999974E-6 : f32
    %181 = vector.broadcast %cst_47 : f32 to vector<16x1xf32>
    %182 = arith.addf %178, %181 : vector<16x1xf32>
    %183 = math.rsqrt %182 : vector<16x1xf32>
    %184 = vector.broadcast %183 : vector<16x1xf32> to vector<16x32xf32>
    %185 = arith.mulf %180, %184 : vector<16x32xf32>
    %186 = vector.broadcast %16 : vector<1x32xf32> to vector<16x32xf32>
    %187 = arith.mulf %185, %186 : vector<16x32xf32>
    %188 = vector.broadcast %17 : vector<1x32xf32> to vector<16x32xf32>
    %189 = arith.addf %187, %188 : vector<16x32xf32>
    %190 = vector.shape_cast %189 : vector<16x32xf32> to vector<2x8x32xf32>
    %191 = vector.extract_strided_slice %190 {offsets = [0, 0, 0], sizes = [2, 1, 32], strides = [1, 1, 1]} : vector<2x8x32xf32> to vector<2x1x32xf32>
    %192 = vector.shape_cast %191 : vector<2x1x32xf32> to vector<2x32xf32>
    %193 = vector.extract_strided_slice %190 {offsets = [0, 1, 0], sizes = [2, 1, 32], strides = [1, 1, 1]} : vector<2x8x32xf32> to vector<2x1x32xf32>
    %194 = vector.shape_cast %193 : vector<2x1x32xf32> to vector<2x32xf32>
    %195 = vector.extract_strided_slice %190 {offsets = [0, 2, 0], sizes = [2, 1, 32], strides = [1, 1, 1]} : vector<2x8x32xf32> to vector<2x1x32xf32>
    %196 = vector.shape_cast %195 : vector<2x1x32xf32> to vector<2x32xf32>
    %197 = vector.extract_strided_slice %190 {offsets = [0, 3, 0], sizes = [2, 1, 32], strides = [1, 1, 1]} : vector<2x8x32xf32> to vector<2x1x32xf32>
    %198 = vector.shape_cast %197 : vector<2x1x32xf32> to vector<2x32xf32>
    %199 = vector.extract_strided_slice %190 {offsets = [0, 4, 0], sizes = [2, 1, 32], strides = [1, 1, 1]} : vector<2x8x32xf32> to vector<2x1x32xf32>
    %200 = vector.shape_cast %199 : vector<2x1x32xf32> to vector<2x32xf32>
    %201 = vector.extract_strided_slice %190 {offsets = [0, 5, 0], sizes = [2, 1, 32], strides = [1, 1, 1]} : vector<2x8x32xf32> to vector<2x1x32xf32>
    %202 = vector.shape_cast %201 : vector<2x1x32xf32> to vector<2x32xf32>
    %203 = vector.extract_strided_slice %190 {offsets = [0, 6, 0], sizes = [2, 1, 32], strides = [1, 1, 1]} : vector<2x8x32xf32> to vector<2x1x32xf32>
    %204 = vector.shape_cast %203 : vector<2x1x32xf32> to vector<2x32xf32>
    %205 = vector.extract_strided_slice %190 {offsets = [0, 7, 0], sizes = [2, 1, 32], strides = [1, 1, 1]} : vector<2x8x32xf32> to vector<2x1x32xf32>
    %206 = vector.shape_cast %205 : vector<2x1x32xf32> to vector<2x32xf32>
    %207 = tpu.concatenate %192, %194, %196, %198, %200, %202, %204, %206 in 1 : vector<2x32xf32>, vector<2x32xf32>, vector<2x32xf32>, vector<2x32xf32>, vector<2x32xf32>, vector<2x32xf32>, vector<2x32xf32>, vector<2x32xf32> -> vector<2x256xf32>
    %c0_48 = arith.constant 0 : index
    %c0_49 = arith.constant 0 : index
    %208 = vector.load %arg4[%c0_48, %c0_49] : memref<2x256xf32, #tpu.memory_space<vmem>>, vector<2x256xf32>
    tpu.vector_store %arg4[%c0_48, %c0_49], %207 {strides = array<i32>} : memref<2x256xf32, #tpu.memory_space<vmem>>, vector<2x256xf32>,
    return
  }
  func.func @transform_0(%arg0: i32) -> (i32, i32) {
    %c0_i32 = arith.constant 0 : i32
    %c0_i32_0 = arith.constant 0 : i32
    return %arg0, %c0_i32 : i32, i32
  }
  func.func @transform_1(%arg0: i32) -> (i32, i32) {
    %c0_i32 = arith.constant 0 : i32
    %c0_i32_0 = arith.constant 0 : i32
    %c0_i32_1 = arith.constant 0 : i32
    return %c0_i32, %c0_i32_0 : i32, i32
  }
  func.func @transform_2(%arg0: i32) -> (i32, i32) {
    %c0_i32 = arith.constant 0 : i32
    %c0_i32_0 = arith.constant 0 : i32
    %c0_i32_1 = arith.constant 0 : i32
    return %c0_i32, %c0_i32_0 : i32, i32
  }
  func.func @transform_3(%arg0: i32) -> (i32, i32) {
    %c0_i32 = arith.constant 0 : i32
    %c0_i32_0 = arith.constant 0 : i32
    return %arg0, %c0_i32 : i32, i32
  }
}

</mosaic_0001>

<bundles_post_ra>
// kernel: tpu_custom_call.1
= control target key start
LH: loop header
LB: loop body
LE: loop exit
PB: predicated region body
PF: predicated region fallthrough
CT: control target
= control target key end

     0   :  { %8 = vsyncpa [#allocation3], 0  ;;  %s4072_s0 = inlined_call_operand.hbm [shape: f32[2,24], index: 0, kind: input, shape index: {}]   ;;  %s4073_s1 = inlined_call_operand.hbm [shape: f32[16,256], index: 1, kind: input, shape index: {}]   ;;  %s4074_s2 = inlined_call_operand.hbm [shape: f32[160,256], index: 2, kind: input, shape index: {}]   ;;  %s4075_s3 = inlined_call_operand.hbm [shape: f32[2,256], index: 3, kind: output, shape index: {}]  }
   0x1   :  { %9 = vsyncpa [#allocation6], 0 }
   0x2   :  { %10 = vsyncpa [#allocation4], 0  ;;  %s3416_s12 = smov [#allocation5]   ;;  %s3322_s16 = scalar_lea.hbm %s4073_s1, 512 }
   0x3   :  { %s26_s13 = sshll.u32 %s3416_s12, 4  ;;  %p3323_p0 = scmp.ne.s32.totalorder %s4073_s1, %s3322_s16  ;;  %s27_s13 = int_to_ptr.vmem [resolvable:$true] %s26_s13 }
   0x4   :  { %p3326_p1 = scmp.lt.u32.totalorder %s3322_s16, %s4073_s1 }
   0x6   :  { %p3328_p2 = pnand %p3326_p1, %p3323_p0 }
   0x8   :  { %3331 = shalt.err (!%p3328_p2)
}
   0x9   :  { %s3332_s21 = scalar_lea.vmem %s27_s13, 512  ;;  %p3337_p4 = scmp.lt.s32.totalorder %s27_s13, %s27_s13 }
   0xa   :  { %p3333_p3 = scmp.ne.s32.totalorder %s27_s13, %s3332_s21  ;;  %p3338_p5 = scmp.lt.s32.totalorder %s3332_s21, %s3332_s21 }
   0xc   :  { %p3339_p6 = por %p3338_p5, %p3337_p4 }
   0xe   :  { %p3340_p7 = pnand %p3339_p6, %p3333_p3 }
  0x10   :  { %3343 = shalt.err (!%p3340_p7)
}
  0x11   :  { %s3417_s22 = smov 256   ;;  %s3418_s23 = smov 16  }
  0x12   :  { %32 = dma.hbm_to_vmem [thread:$0]  %s4073_s1, 512, %s27_s13, [#allocation6], %s3417_s22, %s3417_s22, %s3418_s23  }
  0x13   :  { %s3419_s26 = smov [#allocation2]   ;;  %s3420_s28 = smov [#allocation7]  }
  0x14   :  { %s17_s27 = sshll.u32 %s3419_s26, 4  ;;  %s38_s29 = sshll.u32 %s3420_s28, 4  ;;  %s18_s27 = int_to_ptr.vmem [resolvable:$true] %s17_s27  ;;  %s39_s29 = int_to_ptr.vmem [resolvable:$true] %s38_s29 }
  0x15   :  { %s3344_s5 = scalar_lea.hbm %s4072_s0, 32 }
  0x16   :  { %p3345_p8 = scmp.ne.s32.totalorder %s4072_s0, %s3344_s5  ;;  %p3348_p9 = scmp.lt.u32.totalorder %s3344_s5, %s4072_s0 }
  0x18   :  { %p3350_p10 = pnand %p3348_p9, %p3345_p8 }
  0x1a   :  { %3353 = shalt.err (!%p3350_p10)
}
  0x1b   :  { %s3354_s1 = scalar_lea.vmem %s18_s27, 32  ;;  %p3359_p12 = scmp.lt.s32.totalorder %s18_s27, %s18_s27 }
  0x1c   :  { %p3355_p11 = scmp.ne.s32.totalorder %s18_s27, %s3354_s1  ;;  %p3360_p13 = scmp.lt.s32.totalorder %s3354_s1, %s3354_s1 }
  0x1e   :  { %p3361_p0 = por %p3360_p13, %p3359_p12 }
  0x20   :  { %p3362_p1 = pnand %p3361_p0, %p3355_p11 }
  0x22   :  { %3365 = shalt.err (!%p3362_p1)
}
  0x23   :  { %20 = dma.hbm_to_vmem [thread:$0]  %s4072_s0, 32, %s18_s27, [#allocation3]  }
  0x24   :  { %s3366_s14 = scalar_lea.hbm %s4074_s2, 5120 }
  0x25   :  { %p3367_p2 = scmp.ne.s32.totalorder %s4074_s2, %s3366_s14  ;;  %p3370_p3 = scmp.lt.u32.totalorder %s3366_s14, %s4074_s2 }
  0x27   :  { %p3372_p4 = pnand %p3370_p3, %p3367_p2 }
  0x29   :  { %3375 = shalt.err (!%p3372_p4)
}
  0x2a   :  { %s3376_s19 = scalar_lea.vmem %s39_s29, 5120  ;;  %p3381_p6 = scmp.lt.s32.totalorder %s39_s29, %s39_s29 }
  0x2b   :  { %p3377_p5 = scmp.ne.s32.totalorder %s39_s29, %s3376_s19  ;;  %p3382_p7 = scmp.lt.s32.totalorder %s3376_s19, %s3376_s19 }
  0x2d   :  { %p3383_p8 = por %p3382_p7, %p3381_p6 }
  0x2f   :  { %p3384_p9 = pnand %p3383_p8, %p3377_p5 }
  0x31   :  { %3387 = shalt.err (!%p3384_p9)
}
  0x32   :  { %44 = dma.hbm_to_vmem [thread:$0]  %s4074_s2, 5120, %s39_s29, [#allocation6], %s3417_s22, %s3417_s22, %s3418_s23  }
  0x33   :  { %3410 = dma.done.wait [#allocation3], 32  }
  0x34   :  { %3411 = vsyncadd [#allocation3], 4294967264 }
  0x35   :  { %3412 = dma.done.wait [#allocation6], 5632  }
  0x36   :  { %3413 = vsyncadd [#allocation6], 4294961664  ;;  %v55_v0 = vlaneseq  ;;  %v3505_v4 = vld [vmem:[#allocation2] sm:$0x3]  ;;  %v98_v7 = vld [vmem:[#allocation7 + $0x40] sm:$0xff]  ;;  %s3430_s2 = smov 96  }
  0x37   :  { %v99_v8 = vld [vmem:[#allocation7 + $0x50] sm:$0xff]  ;;  %v100_v10 = vld [vmem:[#allocation7 + $0x60] sm:$0xff]  ;;  %v91_v13 = vld [vmem:[#allocation7 + $0x8] sm:$0xff]  ;;  %v3421_v38 = vmov 683565275   ;;  %s3431_s21 = smov 112  }
  0x38   :  { %v3499_v1 = vshrl.u32 %v55_v0, 7  ;;  %v3172_v9 = vpack.c.bf16 %v99_v8, %v98_v7  ;;  %v101_v11 = vld [vmem:[#allocation7 + $0x70] sm:$0xff]  ;;  %v93_v14 = vld [vmem:[#allocation7 + $0x18] sm:$0xff]  ;;  %v77_v16 = vld [vmem:[#allocation5] ss:$0 sm:$0xff]  ;;  %s3432_s22 = smov 64  }
  0x39   :  { %v3176_v12 = vpack.c.bf16 %v101_v11, %v100_v10  ;;  %v3180_v15 = vpack.c.bf16 %v93_v14, %v91_v13  ;;  %3240 = vrcp.f32 %v77_v16  ;;  %v3422_v42 = vmov 2475754826   ;;  %s3433_s23 = smov 32   ;;  %s3435_s24 = smov [#allocation8]  }
  0x3a   :  { %v3502_v2 = vsub.s32 0, %v3499_v1  ;;  %v64_v3 = vsub.s32 1, %v3499_v1  ;;  %3173 = vmatprep.subr.bf16.mxu1 %v3172_v9  ;;  %v3423_v44 = vmov 2131351028   ;;  %v3424_v46 = vmov 2102212464  }
  0x3b   :  { %3175 = vmatpush3.bf16.msra.mxu1 %v3172_v9  ;;  %v3425_v48 = vmov 920167782   ;;  %v3426_v55 = vmov 1326507024   ;;  %s2882_s25 = sshll.u32 %s3435_s24, 4  ;;  %s2883_s25 = int_to_ptr.vmem [resolvable:$true] %s2882_s25 }
  0x3c   :  { %v58_v5 = vrot.slane %v3505_v4, %v3502_v2  ;;  %v65_v6 = vrot.slane %v3505_v4, %v64_v3  ;;  %3177 = vmatprep.subr.bf16.mxu1 %v3176_v12  ;;  %s3388_s26 = scalar_lea.vmem %s2883_s25, 64  ;;  %p3393_p11 = scmp.lt.s32.totalorder %s2883_s25, %s2883_s25 }
  0x3d   :  { %p3389_p10 = scmp.ne.s32.totalorder %s2883_s25, %s3388_s26  ;;  %p3394_p12 = scmp.lt.s32.totalorder %s3388_s26, %s3388_s26 }
  0x3e   :  { %60 = vbcast.lane.b32.xlu0 %v58_v5, 256  ;;  %71 = vbcast.lane.b32.xlu1 %v58_v5, 264 }
  0x3f   :  { %3179 = vmatpush3.bf16.msra.mxu1 %v3176_v12  ;;  %p3395_p13 = por %p3394_p12, %p3393_p11 }
  0x40   :  { %3181 = vmatprep.subr.bf16.mxu1 %v3180_v15 }
  0x41   :  { %p3396_p0 = pnand %p3395_p13, %p3389_p10 }
  0x42   :  { %67 = vbcast.lane.b32.xlu0 %v65_v6, 256  ;;  %75 = vbcast.lane.b32.xlu1 %v65_v6, 264 }
  0x43   :  { %v3241_v17 = vpop.eup %3240 }
  0xb0   :  { %v61_v18 = vpop.permute.xlu0 %60 }
  0xb1   :  { %v3512_v19 = vmul.f32 %v3241_v17, %v61_v18 }
  0xb3   :  { %v120_v20 = vand.u32 2147483647, %v3512_v19  ;;  %v123_v21 = vand.u32 2139095040, %v3512_v19  ;;  %vm122_vm14 = vcmp.lt.s32.totalorder %v3512_v19, 0 }
  0xb4   :  { %v68_v22 = vpop.permute.xlu0 %67 }
  0xb5   :  { %v124_v23 = vshrl.u32 %v123_v21, 23  ;;  %v3516_v24 = vmul.f32 %v3241_v17, %v68_v22  ;;  %v127_v25 = vand.u32 8388607, %v120_v20  ;;  %vm121_vm15 = vcmp.le.f32.partialorder %v120_v20, 0.7853982 }
  0xb7   :  { %v2892_v26 = vadd.s32 4294967169, %v124_v23  ;;  %v227_v27 = vand.u32 2139095040, %v3516_v24  ;;  %v128_v29 = vor.u32 8388608, %v127_v25  ;;  %v224_v31 = vand.u32 2147483647, %v3516_v24 }
  0xb9   :  { %v130_v28 = vadd.s32 1, %v2892_v26  ;;  %v228_v30 = vshrl.u32 %v227_v27, 23  ;;  %v3522_v36 = vshll.u32 %v128_v29, 8  ;;  %v231_v40 = vand.u32 8388607, %v224_v31 }
  0xbb   :  { %vm131_vm0 = vcmp.gt.s32.totalorder %v130_v28, 0  ;;  %v2896_v33 = vadd.s32 4294967169, %v228_v30  ;;  %v232_v11 = vor.u32 8388608, %v231_v40 }
  0xbc   :  { %v132_v32 = vsel %vm131_vm0, %v130_v28, 0  ;;  %vm226_vm0 = vcmp.lt.s32.totalorder %v3516_v24, 0 }
  0xbd   :  { %v133_v34 = vshrl.u32 %v132_v32, 5  ;;  %v134_v35 = vand.u32 31, %v132_v32  ;;  %v234_v41 = vadd.s32 1, %v2896_v33  ;;  %v272_v27 = vshll.u32 %v232_v11, 8 }
  0xbf   :  { %v135_v37 = vsub.s32 32, %v134_v35  ;;  %v137_v39 = vshll.u32 %v3421_v38, %v134_v35  ;;  %v140_v43 = vshll.u32 %v3422_v42, %v134_v35  ;;  %v143_v45 = vshll.u32 %v3423_v44, %v134_v35 }
  0xc0   :  { %v146_v47 = vshll.u32 %v3424_v46, %v134_v35  ;;  %v149_v49 = vshll.u32 %v3425_v48, %v134_v35  ;;  %vm152_vm1 = vcmp.lt.s32.totalorder %v133_v34, 1  ;;  %vm154_vm2 = vcmp.lt.s32.totalorder %v133_v34, 3 }
  0xc1   :  { %v138_v50 = vshrl.u32 %v3422_v42, %v135_v37  ;;  %v141_v51 = vshrl.u32 %v3423_v44, %v135_v37  ;;  %v144_v52 = vshrl.u32 %v3424_v46, %v135_v37  ;;  %v136_v53 = vshrl.u32 %v3421_v38, %v135_v37 }
  0xc2   :  { %v147_v54 = vshrl.u32 %v3425_v48, %v135_v37  ;;  %v150_v56 = vshrl.u32 %v3426_v55, %v135_v37  ;;  %vm235_vm3 = vcmp.gt.s32.totalorder %v234_v41, 0  ;;  %vm155_vm4 = vcmp.lt.s32.totalorder %v133_v34, 4 }
  0xc3   :  { %v139_v57 = vor.u32 %v138_v50, %v137_v39  ;;  %v142_v58 = vor.u32 %v141_v51, %v140_v43  ;;  %v145_v59 = vor.u32 %v144_v52, %v143_v45  ;;  %v236_v62 = vsel %vm235_vm3, %v234_v41, 0 }
  0xc4   :  { %v148_v60 = vor.u32 %v147_v54, %v146_v47  ;;  %v151_v61 = vor.u32 %v150_v56, %v149_v49  ;;  %vm153_vm5 = vcmp.lt.s32.totalorder %v133_v34, 2  ;;  %v238_v14 = vand.u32 31, %v236_v62 }
  0xc5   :  { %v156_v63 = vsel %vm152_vm1, %v136_v53, %v139_v57  ;;  %v157_v5 = vsel %vm155_vm4, %v145_v59, 2102212464  ;;  %v160_v6 = vsel %vm152_vm1, %v139_v57, %v142_v58  ;;  %v164_v7 = vsel %vm152_vm1, %v142_v58, %v145_v59 }
  0xc6   :  { %v158_v8 = vsel %vm154_vm2, %v142_v58, %v157_v5  ;;  %v161_v9 = vsel %vm155_vm4, %v148_v60, 920167782  ;;  %v165_v10 = vsel %vm155_vm4, %v151_v61, 1326507024  ;;  %v237_v25 = vshrl.u32 %v236_v62, 5 }
  0xc7   :  { %v162_v12 = vsel %vm154_vm2, %v145_v59, %v161_v9  ;;  %v166_v13 = vsel %vm154_vm2, %v148_v60, %v165_v10  ;;  %v159_v15 = vsel %vm153_vm5, %v156_v63, %v158_v8  ;;  %v239_v26 = vsub.s32 32, %v238_v14 }
  0xc8   :  { %v163_v16 = vsel %vm153_vm5, %v160_v6, %v162_v12  ;;  %v167_v17 = vsel %vm153_vm5, %v164_v7, %v166_v13  ;;  %v175_v28 = vmul.u32 %v3522_v36, %v159_v15  ;;  %v241_v29 = vshll.u32 %v3421_v38, %v238_v14 }
  0xc9   :  { %v3535_v18 = vmul.u32.u64.low %v3522_v36, %v167_v17  ;;  %v3536_v21 = vmul.u32.u64.high %v3522_v36, %v167_v17, %v3535_v18  ;;  %v3539_v22 = vmul.u32.u64.low %v3522_v36, %v163_v16  ;;  %v3540_v23 = vmul.u32.u64.high %v3522_v36, %v163_v16, %v3539_v22 }
  0xca   :  { %v244_v30 = vshll.u32 %v3422_v42, %v238_v14  ;;  %v247_v32 = vshll.u32 %v3423_v44, %v238_v14  ;;  %v242_v33 = vshrl.u32 %v3422_v42, %v239_v26  ;;  %v245_v34 = vshrl.u32 %v3423_v44, %v239_v26 }
  0xcb   :  { %v248_v35 = vshrl.u32 %v3424_v46, %v239_v26  ;;  %v250_v37 = vshll.u32 %v3424_v46, %v238_v14  ;;  %vm177_vm6 = vc.u32 %v3536_v21, %v3539_v22  ;;  %v178_v39 = vadd.s32 1, %v3540_v23 }
  0xcc   :  { %v251_v40 = vshrl.u32 %v3425_v48, %v239_v26  ;;  %v253_v41 = vshll.u32 %v3425_v48, %v238_v14  ;;  %v243_v43 = vor.u32 %v242_v33, %v241_v29  ;;  %v246_v45 = vor.u32 %v245_v34, %v244_v30 }
  0xcd   :  { %v249_v47 = vor.u32 %v248_v35, %v247_v32  ;;  %v254_v49 = vshrl.u32 %v3426_v55, %v239_v26  ;;  %v179_v36 = vsel %vm177_vm6, %v178_v39, %v3540_v23  ;;  %vm256_vm7 = vcmp.lt.s32.totalorder %v237_v25, 1 }
  0xce   :  { %v252_v50 = vor.u32 %v251_v40, %v250_v37  ;;  %vm259_vm8 = vcmp.lt.s32.totalorder %v237_v25, 4  ;;  %v180_v42 = vadd.s32 %v179_v36, %v175_v28  ;;  %vm258_vm9 = vcmp.lt.s32.totalorder %v237_v25, 3 }
  0xcf   :  { %v255_v44 = vor.u32 %v254_v49, %v253_v41  ;;  %v261_v46 = vsel %vm259_vm8, %v249_v47, 2102212464  ;;  %v240_v51 = vshrl.u32 %v3421_v38, %v239_v26  ;;  %v264_v52 = vsel %vm256_vm7, %v243_v43, %v246_v45 }
  0xd0   :  { %v265_v53 = vsel %vm259_vm8, %v252_v50, 920167782  ;;  %v268_v54 = vsel %vm256_vm7, %v246_v45, %v249_v47  ;;  %v181_v56 = vadd.s32 536870912, %v180_v42  ;;  %vm257_vm10 = vcmp.lt.s32.totalorder %v237_v25, 2 }
  0xd1   :  { %v266_v48 = vsel %vm258_vm9, %v249_v47, %v265_v53  ;;  %v269_v57 = vsel %vm259_vm8, %v255_v44, 1326507024  ;;  %v260_v58 = vsel %vm256_vm7, %v240_v51, %v243_v43  ;;  %v262_v55 = vsel %vm258_vm9, %v246_v45, %v261_v46 }
  0xd2   :  { %v267_v59 = vsel %vm257_vm10, %v264_v52, %v266_v48  ;;  %v270_v60 = vsel %vm258_vm9, %v252_v50, %v269_v57  ;;  %v182_v61 = vshrl.u32 %v181_v56, 30  ;;  %v263_v8 = vsel %vm257_vm10, %v260_v58, %v262_v55 }
  0xd3   :  { %v271_v62 = vsel %vm257_vm10, %v268_v54, %v270_v60  ;;  %v3550_v63 = vmul.u32.u64.low %v272_v27, %v267_v59  ;;  %v3551_v5 = vmul.u32.u64.high %v272_v27, %v267_v59, %v3550_v63  ;;  %v279_v11 = vmul.u32 %v272_v27, %v263_v8  ;;  %v72_v8 = vpop.permute.xlu1 %71 }
  0xd4   :  { %v3553_v6 = vmul.u32.u64.low %v272_v27, %v271_v62  ;;  %v3554_v7 = vmul.u32.u64.high %v272_v27, %v271_v62, %v3553_v6  ;;  %v183_v38 = vshll.u32 %v182_v61, 30  ;;  %v176_v29 = vadd.s32 %v3539_v22, %v3536_v21 }
  0xd5   :  { %v282_v10 = vadd.s32 1, %v3551_v5  ;;  %v206_v50 = vsub.s32 4, %v182_v61  ;;  %vm225_vm1 = vcmp.le.f32.partialorder %v224_v31, 0.7853982  ;;  %vm212_vm9 = vweird.f32 %v3512_v19 }
  0xd6   :  { %v184_v9 = vsub.s32 %v180_v42, %v183_v38  ;;  %vm281_vm11 = vc.u32 %v3554_v7, %v3550_v63  ;;  %v280_v21 = vadd.s32 %v3550_v63, %v3554_v7  ;;  %v3567_v7 = vand.u32 127, %v55_v0 }
  0xd7   :  { %v283_v13 = vsel %vm281_vm11, %v282_v10, %v3551_v5  ;;  %v207_v56 = vsel %vm122_vm14, %v206_v50, %v182_v61  ;;  %v78_v61 = vld [vmem:[#allocation5 + $0x1] ss:$0 sm:$0xff]  ;;  %vm544_vm10 = vcmp.eq.s32.totalorder %v3499_v1, 0  ;;  %vm549_vm11 = vcmask 261120  }
  0xd8   :  { %v186_v12 = vsub.s32 0, %v184_v9  ;;  %v284_v14 = vadd.s32 %v283_v13, %v279_v11  ;;  %v209_v59 = vsel %vm121_vm15, 0, %v207_v56  ;;  %vm119_vm2 = vcmp.lt.s32.totalorder %v3567_v7, 16 }
  0xd9   :  { %v213_v63 = vadd.s32 3, %v209_v59  ;;  %v421_v20 = vand.u32 3, %v209_v59  ;;  %v96_v59 = vld [vmem:[#allocation7 + $0x30] sm:$0xff] }
  0xda   :  { %v2893_v15 = vmin.u32 %v186_v12, %v184_v9  ;;  %v285_v16 = vadd.s32 536870912, %v284_v14 }
  0xdb   :  { %vm426_vm3 = vcmp.eq.s32.totalorder %v421_v20, 2  ;;  %vm423_vm6 = vcmp.eq.s32.totalorder %v421_v20, 0  ;;  %vm422_vm8 = vcmp.lt.s32.totalorder %v421_v20, 2 }
  0xdc   :  { %v188_v17 = vclz %v2893_v15  ;;  %v286_v18 = vshrl.u32 %v285_v16, 30  ;;  %v538_v15 = vmul.f32 %v78_v61, %v72_v8  ;;  %v3429_v8 = vmov 0  }
  0xde   :  { %v2894_v23 = vadd.s32 4294967294, %v188_v17  ;;  %v287_v25 = vshll.u32 %v286_v18, 30  ;;  %v310_v6 = vsub.s32 4, %v286_v18 }
  0xe0   :  { %vm2895_vm12 = vcmp.lt.s32.totalorder %v2894_v23, 0  ;;  %v288_v28 = vsub.s32 %v284_v14, %v287_v25  ;;  %v311_v11 = vsel %vm226_vm0, %v310_v6, %v286_v18  ;;  %v3428_v6 = vmov 1966171168  }
  0xe1   :  { %v191_v26 = vsel %vm2895_vm12, 0, %v2894_v23  ;;  %v313_v17 = vsel %vm225_vm1, 0, %v311_v11 }
  0xe2   :  { %v192_v30 = vsub.s32 32, %v191_v26  ;;  %v196_v27 = vsub.s32 4294967266, %v191_v26  ;;  %v290_v32 = vsub.s32 0, %v288_v28  ;;  %v193_v33 = vshll.u32 %v184_v9, %v191_v26 }
  0xe3   :  { %v214_v9 = vand.u32 3, %v213_v63  ;;  %v719_v63 = vmul.u32 4, %v3499_v1 }
  0xe4   :  { %v194_v34 = vshrl.u32 %v176_v29, %v192_v30  ;;  %v197_v35 = vadd.s32 127, %v196_v27  ;;  %v2897_v37 = vmin.u32 %v290_v32, %v288_v28  ;;  %v317_v29 = vadd.s32 3, %v313_v17 }
  0xe5   :  { %vm219_vm4 = vcmp.eq.s32.totalorder %v214_v9, 2  ;;  %vm216_vm5 = vcmp.eq.s32.totalorder %v214_v9, 0  ;;  %vm215_vm7 = vcmp.lt.s32.totalorder %v214_v9, 2 }
  0xe6   :  { %v195_v39 = vor.u32 %v194_v34, %v193_v33  ;;  %v198_v40 = vshll.u32 %v197_v35, 23  ;;  %v292_v41 = vclz %v2897_v37  ;;  %v79_v33 = vld [vmem:[#allocation5 + $0x2] ss:$0 sm:$0xff]  ;;  %v318_v35 = vand.u32 3, %v317_v29 }
  0xe7   :  { %v524_v37 = vand.u32 3, %v313_v17 }
  0xe8   :  { %v199_v43 = vor.u32 4788187, %v198_v40  ;;  %v2898_v45 = vadd.s32 4294967294, %v292_v41  ;;  %v202_v49 = vcvt.s32.f32 %v195_v39  ;;  %v76_v39 = vpop.permute.xlu1 %75  ;;  %vm323_vm12 = vcmp.eq.s32.totalorder %v318_v35, 2 }
  0xea   :  { %v200_v47 = vand.u32 2147483647, %v199_v43  ;;  %vm2899_vm13 = vcmp.lt.s32.totalorder %v2898_v45, 0 }
  0xeb   :  { %v295_v42 = vsel %vm2899_vm13, 0, %v2898_v45  ;;  %vm529_vm13 = vcmp.eq.s32.totalorder %v524_v37, 2 }
  0xec   :  { %v203_v36 = vmul.f32 %v202_v49, %v200_v47  ;;  %v296_v22 = vsub.s32 32, %v295_v42  ;;  %v300_v44 = vsub.s32 4294967266, %v295_v42  ;;  %v297_v51 = vshll.u32 %v288_v28, %v295_v42 }
  0xed   :  { %v539_v47 = vmul.f32 %v78_v61, %v76_v39 }
  0xee   :  { %v204_v46 = vxor.u32 2147483648, %v203_v36  ;;  %v298_v52 = vshrl.u32 %v280_v21, %v296_v22  ;;  %v301_v53 = vadd.s32 127, %v300_v44  ;;  %v90_v44 = vld [vmem:[#allocation7] sm:$0xff] }
  0xf0   :  { %v205_v54 = vsel %vm122_vm14, %v204_v46, %v203_v36  ;;  %v299_v57 = vor.u32 %v298_v52, %v297_v51  ;;  %v302_v58 = vshll.u32 %v301_v53, 23  ;;  %vm320_vm14 = vcmp.eq.s32.totalorder %v318_v35, 0  ;;  %v92_v46 = vld [vmem:[#allocation7 + $0x10] sm:$0xff]  ;;  %v95_v53 = vld [vmem:[#allocation7 + $0x28] sm:$0xff] }
  0xf1   :  { %v208_v48 = vsel %vm121_vm15, %v3512_v19, %v205_v54  ;;  %vm526_vm15 = vcmp.eq.s32.totalorder %v524_v37, 0  ;;  %v97_v54 = vld [vmem:[#allocation7 + $0x38] sm:$0xff] }
  0xf2   :  { %3242 = vcosq.f32 %v208_v48  ;;  %v303_v55 = vor.u32 4788187, %v302_v58  ;;  %v306_v62 = vcvt.s32.f32 %v299_v57  ;;  %v3182_v57 = vpack.c.bf16 %v92_v46, %v90_v44 }
  0xf3   :  { %3244 = vsinq.f32 %v208_v48  ;;  %v3184_v58 = vpack.c.bf16 %v97_v54, %v95_v53 }
  0xf4   :  { %v304_v60 = vand.u32 2147483647, %v303_v55  ;;  %v94_v55 = vld [vmem:[#allocation7 + $0x20] sm:$0xff] }
  0xf6   :  { %v307_v5 = vmul.f32 %v306_v62, %v304_v60  ;;  %v3427_v62 = vmov 0.0  }
  0xf8   :  { %v308_v38 = vxor.u32 2147483648, %v307_v5 }
  0xfa   :  { %v309_v10 = vsel %vm226_vm0, %v308_v38, %v307_v5  ;;  %vm319_vm0 = vcmp.lt.s32.totalorder %v318_v35, 2  ;;  %v720_v5 = vsub.s32 %v3567_v7, %v719_v63  ;;  %v727_v38 = vunpack.c.l.s4 %v3428_v6 }
  0xfb   :  { %v312_v13 = vsel %vm225_vm1, %v3516_v24, %v309_v10  ;;  %vm525_vm1 = vcmp.lt.s32.totalorder %v524_v37, 2 }
  0xfc   :  { %v3243_v12 = vpop.eup %3242  ;;  %3246 = vcosq.f32 %v312_v13  ;;  %v728_v20 = vunpack.c.0.s8 %v727_v38 }
  0xfd   :  { %v3245_v14 = vpop.eup %3244  ;;  %v220_v0 = vxor.u32 2147483648, %v3243_v12  ;;  %3248 = vsinq.f32 %v312_v13 }
  0xfe   :  { %v217_v16 = vxor.u32 2147483648, %v3245_v14  ;;  %v731_v61 = vsub.s32 %v728_v20, %v3499_v1 }
  0xff   :  { %v221_v23 = vsel %vm219_vm4, %v220_v0, %v3245_v14  ;;  %v428_v31 = vsel %vm426_vm3, %v220_v0, %v3245_v14  ;;  %vm316_vm3 = vweird.f32 %v3516_v24  ;;  %v3186_v24 = vpack.c.bf16 %v96_v59, %v94_v55 }
 0x100   :  { %v218_v18 = vsel %vm216_vm5, %v3243_v12, %v217_v16  ;;  %v425_v25 = vsel %vm423_vm6, %v3243_v12, %v217_v16  ;;  %vm722_vm4 = vcmp.lt.s32.totalorder %v720_v5, 4 }
 0x101   :  { %v222_v26 = vsel %vm215_vm7, %v218_v18, %v221_v23  ;;  %v429_v28 = vsel %vm422_vm8, %v425_v25, %v428_v31 }
 0x102   :  { %v223_v30 = vsel %vm212_vm9, nan, %v222_v26  ;;  %v430_v27 = vsel %vm212_vm9, nan, %v429_v28 }
 0x103   :  { %v536_v32 = vsel %vm119_vm2, %v223_v30, %v430_v27 }
 0x104   :  { %v540_v34 = vadd.f32 %v538_v15, %v536_v32 }
 0x106   :  { %v3580_v40 = vsel %vm544_vm10, %v79_v33, %v540_v34  ;;  %v3247_v19 = vpop.eup %3246 }
 0x107   :  { %3031 = vmatprep.mubr.msk.f32.mxu1 %vm549_vm11, %v3580_v40  ;;  %v3249_v41 = vpop.eup %3248  ;;  %v324_v43 = vxor.u32 2147483648, %v3247_v19 }
 0x108   :  { %v321_v45 = vxor.u32 2147483648, %v3249_v41 }
 0x109   :  { %v325_v49 = vsel %vm323_vm12, %v324_v43, %v3249_v41  ;;  %v531_v36 = vsel %vm529_vm13, %v324_v43, %v3249_v41 }
 0x10a   :  { %v322_v50 = vsel %vm320_vm14, %v3247_v19, %v321_v45  ;;  %v528_v42 = vsel %vm526_vm15, %v3247_v19, %v321_v45  ;;  %v82_v45 = vld [vmem:[#allocation5 + $0x4] ss:$8 sm:$0x3] }
 0x10b   :  { %v326_v21 = vsel %vm319_vm0, %v322_v50, %v325_v49  ;;  %v532_v22 = vsel %vm525_vm1, %v528_v42, %v531_v36  ;;  %v80_v36 = vld [vmem:[#allocation5 + $0x3] ss:$0 sm:$0xff] }
 0x10c   :  { %v327_v51 = vsel %vm316_vm3, nan, %v326_v21  ;;  %v533_v52 = vsel %vm316_vm3, nan, %v532_v22 }
 0x10d   :  { %v537_v56 = vsel %vm119_vm2, %v327_v51, %v533_v52  ;;  %vm721_vm2 = vcmp.ge.s32.totalorder %v720_v5, 0  ;;  %v635_v51 = vrot.slane %v82_v45, %v3502_v2 }
 0x10e   :  { %v541_v48 = vadd.f32 %v539_v47, %v537_v56  ;;  %vm723_vm5 = vmand %vm721_vm2, %vm722_vm4 }
 0x10f   :  { %v724_v9 = vsel %vm723_vm5, 1, %v3429_v8 }
 0x110   :  { %v3589_v60 = vsel %vm544_vm10, %v79_v33, %v541_v48  ;;  %v725_v10 = vcombine.high %v724_v9, %v724_v9  ;;  %v732_v11 = vrot.slane %v724_v9, %v731_v61  ;;  %v1137_v33 = vrot.slane %v3505_v4, %v731_v61 }
 0x111   :  { %3032 = vmatmul.mubr.msk.f32.vlgmr.msra.gmra.mrb[0].mxu1 %vm549_vm11, %v3589_v60  ;;  %v639_v48 = vrot.slane %v82_v45, %v64_v3 }
 0x112   :  { %3183 = vmatpush1.bf16.msra.mxu1 %v3182_v57  ;;  %706 = vmatprep.mubr.f32.mxu1 %v3427_v62  ;;  %v739_v12 = vrot.slane %v725_v10, %v731_v61  ;;  %v740_v13 = vcombine.high %v732_v11, %v732_v11  ;;  %v748_v0 = vrot.slane %v732_v11, %v731_v61 }
 0x113   :  { %3185 = vmatprep.subr.bf16.mxu1 %v3184_v58  ;;  %v1138_v35 = vcombine.high %v1137_v33, %v1137_v33  ;;  %v1145_v50 = vrot.slane %v1137_v33, %v731_v61 }
 0x114   :  { %v741_v14 = vcombine.high %v739_v12, %v739_v12  ;;  %v762_v15 = vrot.slane %v740_v13, %v731_v61  ;;  %v755_v16 = vrot.slane %v739_v12, %v731_v61  ;;  %v770_v17 = vcombine.high %v748_v0, %v748_v0 }
 0x115   :  { %vm774_vm14 = vcmp.ne.s32.totalorder %v748_v0, 0  ;;  %v1152_v19 = vrot.slane %v1138_v35, %v731_v61  ;;  %v1156_v59 = vrot.slane %v1145_v50, %v3502_v2 }
 0x116   :  { %3187 = vmatpush1.bf16.msra.mxu1 %v3186_v24  ;;  %v772_v7 = vcombine.high %v762_v15, %v762_v15  ;;  %v769_v23 = vrot.slane %v741_v14, %v731_v61  ;;  %v771_v31 = vcombine.high %v755_v16, %v755_v16  ;;  %vm775_vm6 = vcmp.ne.s32.totalorder %v762_v15, 0 }
 0x117   :  { %vm776_vm7 = vcmp.ne.s32.totalorder %v770_v17, 0  ;;  %v783_v18 = vsel %vm775_vm6, 1, %v3429_v8  ;;  %vm778_vm9 = vcmp.ne.s32.totalorder %v755_v16, 0  ;;  %v782_v34 = vsel %vm774_vm14, 1, %v3429_v8 }
 0x118   :  { %vm777_vm8 = vcmp.ne.s32.totalorder %v772_v7, 0  ;;  %v784_v25 = vsel %vm776_vm7, 1, %v3429_v8  ;;  %v773_v28 = vcombine.high %v769_v23, %v769_v23  ;;  %vm779_vm10 = vcmp.ne.s32.totalorder %v769_v23, 0 }
 0x119   :  { %2910 = vmatmul.mubr.msk.f32.vlgmr.msra.gmra.mrb[2].mxu1 %vm549_vm11, %v3580_v40  ;;  %v785_v26 = vsel %vm777_vm8, 1, %v3429_v8  ;;  %vm780_vm12 = vcmp.ne.s32.totalorder %v771_v31, 0  ;;  %v786_v29 = vsel %vm778_vm9, 1, %v3429_v8  ;;  %v787_v30 = vsel %vm779_vm10, 1, %v3429_v8 }
 0x11a   :  { %712 = vmatprep.mubr.f32.mxu1 %v3427_v62  ;;  %v788_v27 = vsel %vm780_vm12, 1, %v3429_v8  ;;  %vm781_vm13 = vcmp.ne.s32.totalorder %v773_v28, 0  ;;  %v793_v37 = vrot.slane %v782_v34, %v3502_v2  ;;  %v797_v39 = vrot.slane %v783_v18, %v3502_v2 }
 0x11b   :  { %v789_v32 = vsel %vm781_vm13, 1, %v3429_v8  ;;  %v801_v41 = vrot.slane %v784_v25, %v3502_v2  ;;  %v805_v43 = vrot.slane %v785_v26, %v3502_v2  ;;  %v809_v47 = vrot.slane %v786_v29, %v3502_v2 }
 0x11c   :  { %v813_v49 = vrot.slane %v787_v30, %v3502_v2  ;;  %v817_v4 = vrot.slane %v788_v27, %v3502_v2  ;;  %v821_v42 = vrot.slane %v789_v32, %v3502_v2  ;;  %vm3611_vm15 = vcmp.eq.s32.totalorder %v793_v37, 1 }
 0x11d   :  { %2911 = vmatmul.mubr.msk.f32.gmra.mrb[4].mxu1 %vm549_vm11, %v3589_v60  ;;  %vm3615_vm0 = vcmp.eq.s32.totalorder %v797_v39, 1  ;;  %v1160_v46 = vrot.slane %v1152_v19, %v3502_v2  ;;  %vm3621_vm1 = vcmp.eq.s32.totalorder %v801_v41, 1  ;;  %vm3625_vm3 = vcmp.eq.s32.totalorder %v805_v43, 1 }
 0x11e   :  { %vm3633_vm2 = vcmp.eq.s32.totalorder %v809_v47, 1  ;;  %vm3637_vm4 = vcmp.eq.s32.totalorder %v813_v49, 1  ;;  %vm3644_vm5 = vcmp.eq.s32.totalorder %v817_v4, 1  ;;  %vm3648_vm6 = vcmp.eq.s32.totalorder %v821_v42, 1 }
 0x11f   :  { %vm1183_vm7 = vcmask 64512   ;;  %vm3434_vm8 = vmmov 0   ;;  %vm2698_vm9 = vcmask 523264   ;;  %vm2815_vm10 = vcmask 1041409  }
 0x120   :  { %vm2859_vm12 = vcmask 785408  }
 0x1e4   :  { %v3033_v44 = vpop.f32.mrb[0].mxu1 }
 0x1e5   :  { %v3629_v54 = vadd.f32 %v3033_v44, %v80_v36  ;;  %v622_v56 = vpop.f32.mrb[1].mxu1 }
 0x1e6   :  { %v3641_v55 = vadd.f32 %v622_v56, %v80_v36 }
 0x1e7   :  { %981 = vrot.lane.b32.xlu1 %v3629_v54, %s3430_s2  ;;  %v838_v1 = vsel %vm3611_vm15, %v3629_v54, 0.0  ;;  %v839_v2 = vsel %vm3615_vm0, %v3629_v54, 0.0  ;;  %v840_v3 = vsel %vm3621_vm1, %v3629_v54, 0.0  ;;  %v841_v5 = vsel %vm3625_vm3, %v3629_v54, 0.0 }
 0x1e8   :  { %3050 = vmatprep.mubr.msk.f32.mxu1 %vm549_vm11, %v838_v1  ;;  %847 = vrot.lane.b32.xlu0 %v3641_v55, %s3430_s2  ;;  %v830_v6 = vsel %vm3611_vm15, %v3641_v55, 0.0  ;;  %v831_v38 = vsel %vm3615_vm0, %v3641_v55, 0.0  ;;  %v832_v20 = vsel %vm3621_vm1, %v3641_v55, 0.0  ;;  %v833_v61 = vsel %vm3625_vm3, %v3641_v55, 0.0 }
 0x1e9   :  { %3036 = vmatprep.mubr.msk.f32.mxu0 %vm549_vm11, %v830_v6  ;;  %v842_v8 = vsel %vm3633_vm2, %v3629_v54, 0.0  ;;  %v834_v9 = vsel %vm3633_vm2, %v3641_v55, 0.0  ;;  %v843_v10 = vsel %vm3637_vm4, %v3629_v54, 0.0  ;;  %v835_v11 = vsel %vm3637_vm4, %v3641_v55, 0.0 }
 0x1ea   :  { %v844_v12 = vsel %vm3644_vm5, %v3629_v54, 0.0  ;;  %v836_v13 = vsel %vm3644_vm5, %v3641_v55, 0.0  ;;  %v845_v14 = vsel %vm3648_vm6, %v3629_v54, 0.0  ;;  %v837_v0 = vsel %vm3648_vm6, %v3641_v55, 0.0 }
 0x1eb   :  { %1163 = vrot.lane.b32.xlu1 %v1160_v46, %s3431_s21 }
 0x1ec   :  { %v708_v15 = vpop.f32.mrb[2].mxu1  ;;  %1161 = vrot.lane.b32.xlu0 %v1156_v59, %s3431_s21 }
 0x1ed   :  { %v3706_v16 = vadd.f32 %v708_v15, %v635_v51  ;;  %v710_v17 = vpop.f32.mrb[3].mxu1 }
 0x1ee   :  { %v3708_v7 = vadd.f32 %v710_v17, %v639_v48 }
 0x1ef   :  { %1361 = vrot.lane.b32.xlu1 %v3706_v16, %s3430_s2 }
 0x1f0   :  { %v714_v23 = vpop.f32.mrb[4].mxu1 }
 0x1f1   :  { %v3712_v31 = vadd.f32 %v714_v23, %v635_v51  ;;  %v716_v18 = vpop.f32.mrb[5].mxu1 }
 0x1f2   :  { %v3714_v25 = vadd.f32 %v716_v18, %v639_v48 }
 0x1f3   :  { %1438 = vrot.lane.b32.xlu0 %v3712_v31, %s3430_s2  ;;  %1660 = vrot.lane.b32.xlu1 %v3706_v16, %s3432_s22 }
 0x259   :  { %v982_v26 = vpop.permute.xlu1 %981 }
 0x25a   :  { %3048 = vmatprep.subr.msk.mxu1 %vm549_vm11, %v982_v26  ;;  %v848_v28 = vpop.permute.xlu0 %847 }
 0x25b   :  { %3034 = vmatprep.subr.msk.mxu0 %vm549_vm11, %v848_v28  ;;  %3049 = vmatpush3.xpose.msk.msra.mxu1 %vm549_vm11, %v982_v26 }
 0x25c   :  { %3035 = vmatpush3.xpose.msk.msra.mxu0 %vm549_vm11, %v848_v28  ;;  %3072 = vmatprep.subr.mxu1 %v3427_v62 }
 0x25d   :  { %v3725_v29 = vpop.permute.xlu1 %1163  ;;  %3062 = vmatprep.subr.mxu0 %v3427_v62 }
 0x25e   :  { %3051 = vmatmul.mubr.msk.f32.vlgmr.msra.gmra.mrb[6].mxu1 %vm549_vm11, %v839_v2  ;;  %v3745_v19 = vpop.permute.xlu0 %1161 }
 0x25f   :  { %3037 = vmatmul.mubr.msk.f32.vlgmr.msra.gmra.mrb[0].mxu0 %vm549_vm11, %v831_v38  ;;  %3053 = vmatprep.mubr.msk.f32.mxu1 %vm549_vm11, %v840_v3 }
 0x260   :  { %3073 = vmatpush3.msra.mxu1 %v3706_v16  ;;  %3039 = vmatprep.mubr.msk.f32.mxu0 %vm549_vm11, %v832_v20 }
 0x261   :  { %v1362_v30 = vpop.permute.xlu1 %1361  ;;  %3082 = vmatprep.subr.mxu1 %v3427_v62 }
 0x262   :  { %3054 = vmatmul.mubr.msk.f32.gmra.mrb[8].mxu1 %vm549_vm11, %v841_v5  ;;  %3063 = vmatpush3.msra.mxu0 %v1362_v30 }
 0x263   :  { %3040 = vmatmul.mubr.msk.f32.gmra.mrb[2].mxu0 %vm549_vm11, %v833_v61  ;;  %3056 = vmatprep.mubr.msk.f32.mxu1 %vm549_vm11, %v842_v8 }
 0x264   :  { %3042 = vmatprep.mubr.msk.f32.mxu0 %vm549_vm11, %v834_v9  ;;  %3067 = vmatprep.subr.mxu0 %v3427_v62 }
 0x266   :  { %3057 = vmatmul.mubr.msk.f32.gmra.mrb[10].mxu1 %vm549_vm11, %v843_v10 }
 0x267   :  { %3043 = vmatmul.mubr.msk.f32.gmra.mrb[4].mxu0 %vm549_vm11, %v835_v11  ;;  %3059 = vmatprep.mubr.msk.f32.mxu1 %vm549_vm11, %v844_v12 }
 0x268   :  { %3045 = vmatprep.mubr.msk.f32.mxu0 %vm549_vm11, %v836_v13 }
 0x26a   :  { %3060 = vmatmul.mubr.msk.f32.gmra.mrb[12].mxu1 %vm549_vm11, %v845_v14 }
 0x26b   :  { %3046 = vmatmul.mubr.msk.f32.gmra.mrb[6].mxu0 %vm549_vm11, %v837_v0  ;;  %3074 = vmatprep.mubr.msk.f32.mxu1 %vm3434_vm8, %v3427_v62 }
 0x26c   :  { %3064 = vmatprep.mubr.msk.f32.mxu0 %vm3434_vm8, %v3427_v62 }
 0x331   :  { %v3052_v27 = vpop.f32.mrb[6].mxu1 }
 0x332   :  { %v1123_v32 = vmul.f32 0.5, %v3052_v27  ;;  %v3038_v33 = vpop.f32.mrb[0].mxu0  ;;  %v1075_v34 = vpop.f32.mrb[7].mxu1 }
 0x333   :  { %v1115_v35 = vmul.f32 0.5, %v3038_v33  ;;  %v1122_v37 = vmul.f32 0.5, %v1075_v34  ;;  %v941_v39 = vpop.f32.mrb[1].mxu0 }
 0x334   :  { %v3748_v41 = vadd.f32 %v3725_v29, %v1123_v32  ;;  %v1114_v47 = vmul.f32 0.5, %v941_v39 }
 0x335   :  { %v3055_v43 = vpop.f32.mrb[8].mxu1  ;;  %v3751_v45 = vadd.f32 %v3745_v19, %v1115_v35  ;;  %v3758_v22 = vadd.f32 %v3725_v29, %v1122_v37 }
 0x336   :  { %v3041_v49 = vpop.f32.mrb[2].mxu0  ;;  %v1085_v36 = vpop.f32.mrb[9].mxu1  ;;  %v1211_v50 = vsel %vm1183_vm7, %v3748_v41, -inf  ;;  %v1125_v52 = vmul.f32 0.5, %v3055_v43  ;;  %v3764_v56 = vadd.f32 %v3745_v19, %v1114_v47 }
 0x337   :  { %v1117_v4 = vmul.f32 0.5, %v3041_v49  ;;  %1212 = vmax.xlane.f32.xlu1 %v1211_v50  ;;  %v951_v42 = vpop.f32.mrb[3].mxu0  ;;  %v1187_v21 = vsel %vm1183_vm7, %v3751_v45, -inf  ;;  %v1208_v58 = vsel %vm1183_vm7, %v3758_v22, -inf  ;;  %v1124_v63 = vmul.f32 0.5, %v1085_v36  ;;  %v3841_v43 = vpop.permute.xlu1 %1660 }
 0x338   :  { %v1116_v44 = vmul.f32 0.5, %v951_v42  ;;  %1188 = vmax.xlane.f32.xlu0 %v1187_v21  ;;  %v1184_v3 = vsel %vm1183_vm7, %v3764_v56, -inf  ;;  %v3778_v20 = vadd.f32 %v3725_v29, %v1125_v52  ;;  %v3843_v47 = vpop.permute.xlu0 %1438 }
 0x339   :  { %v3058_v46 = vpop.f32.mrb[10].mxu1  ;;  %v3761_v51 = vadd.f32 %v3745_v19, %v1117_v4  ;;  %v3784_v8 = vadd.f32 %v3725_v29, %v1124_v63 }
 0x33a   :  { %v3044_v53 = vpop.f32.mrb[4].mxu0  ;;  %v1095_v54 = vpop.f32.mrb[11].mxu1  ;;  %v3771_v59 = vadd.f32 %v3745_v19, %v1116_v44  ;;  %v1127_v9 = vmul.f32 0.5, %v3058_v46  ;;  %v1217_v10 = vsel %vm1183_vm7, %v3778_v20, -inf }
 0x33b   :  { %v1119_v48 = vmul.f32 0.5, %v3044_v53  ;;  %v961_v57 = vpop.f32.mrb[5].mxu0  ;;  %v1193_v55 = vsel %vm1183_vm7, %v3761_v51, -inf  ;;  %v1126_v13 = vmul.f32 0.5, %v1095_v54  ;;  %v1214_v14 = vsel %vm1183_vm7, %v3784_v8, -inf }
 0x33c   :  { %1209 = vmax.xlane.f32.xlu0 %v1208_v58  ;;  %1194 = vmax.xlane.f32.xlu1 %v1193_v55  ;;  %v1118_v5 = vmul.f32 0.5, %v961_v57  ;;  %v1190_v38 = vsel %vm1183_vm7, %v3771_v59, -inf  ;;  %v3798_v15 = vadd.f32 %v3725_v29, %v1127_v9 }
 0x33d   :  { %v3061_v24 = vpop.f32.mrb[12].mxu1  ;;  %v3781_v61 = vadd.f32 %v3745_v19, %v1119_v48  ;;  %v3803_v18 = vadd.f32 %v3725_v29, %v1126_v13 }
 0x33e   :  { %v3047_v1 = vpop.f32.mrb[6].mxu0  ;;  %v1105_v2 = vpop.f32.mrb[13].mxu1  ;;  %v3791_v12 = vadd.f32 %v3745_v19, %v1118_v5  ;;  %v1129_v17 = vmul.f32 0.5, %v3061_v24  ;;  %v1223_v23 = vsel %vm1183_vm7, %v3798_v15, -inf }
 0x33f   :  { %v971_v6 = vpop.f32.mrb[7].mxu0  ;;  %v1199_v11 = vsel %vm1183_vm7, %v3781_v61, -inf  ;;  %v1128_v26 = vmul.f32 0.5, %v1105_v2  ;;  %v1220_v28 = vsel %vm1183_vm7, %v3803_v18, -inf }
 0x340   :  { %1185 = vmax.xlane.f32.xlu0 %v1184_v3  ;;  %1191 = vmax.xlane.f32.xlu1 %v1190_v38  ;;  %v1196_v0 = vsel %vm1183_vm7, %v3791_v12, -inf  ;;  %v3808_v30 = vadd.f32 %v3725_v29, %v1129_v17  ;;  %v1120_v34 = vmul.f32 0.5, %v971_v6 }
 0x341   :  { %v3813_v32 = vadd.f32 %v3725_v29, %v1128_v26  ;;  %v1121_v29 = vmul.f32 0.5, %v3047_v1 }
 0x342   :  { %v1229_v27 = vsel %vm1183_vm7, %v3808_v30, -inf  ;;  %v3831_v39 = vadd.f32 %v3745_v19, %v1120_v34 }
 0x343   :  { %v1226_v33 = vsel %vm1183_vm7, %v3813_v32, -inf  ;;  %v3826_v35 = vadd.f32 %v3745_v19, %v1121_v29 }
 0x344   :  { %1218 = vmax.xlane.f32.xlu0 %v1217_v10  ;;  %1200 = vmax.xlane.f32.xlu1 %v1199_v11 }
 0x345   :  { %v1205_v37 = vsel %vm1183_vm7, %v3826_v35, -inf }
 0x348   :  { %1215 = vmax.xlane.f32.xlu0 %v1214_v14  ;;  %1197 = vmax.xlane.f32.xlu1 %v1196_v0 }
 0x34c   :  { %1224 = vmax.xlane.f32.xlu0 %v1223_v23 }
 0x350   :  { %1221 = vmax.xlane.f32.xlu0 %v1220_v28 }
 0x354   :  { %1230 = vmax.xlane.f32.xlu0 %v1229_v27 }
 0x358   :  { %1227 = vmax.xlane.f32.xlu0 %v1226_v33 }
 0x359   :  { %1814 = vrot.lane.b32.xlu1 %v3706_v16, %s3433_s23  ;;  %v1202_v16 = vsel %vm1183_vm7, %v3831_v39, -inf }
 0x35d   :  { %1890 = vrot.lane.b32.xlu1 %v3712_v31, %s3433_s23 }
 0x36e   :  { %1736 = vrot.lane.b32.xlu0 %v3712_v31, %s3432_s22 }
 0x372   :  { %2272 = vrot.lane.b32.xlu0 %v3708_v7, %s3432_s22 }
 0x381   :  { %1206 = vmax.xlane.f32.xlu1 %v1205_v37 }
 0x385   :  { %1203 = vmax.xlane.f32.xlu1 %v1202_v16 }
 0x396   :  { %2117 = vrot.lane.b32.xlu1 %v3708_v7, %s3430_s2 }
 0x39a   :  { %2194 = vrot.lane.b32.xlu1 %v3714_v25, %s3430_s2 }
 0x39e   :  { %2348 = vrot.lane.b32.xlu1 %v3714_v25, %s3432_s22 }
 0x3c4   :  { %v1213_v19 = vpop.xlane.xlu1 %1212 }
 0x3c5   :  { %v1241_v49 = vsub.f32 %v3748_v41, %v1213_v19  ;;  %v1189_v36 = vpop.xlane.xlu0 %1188 }
 0x3c6   :  { %v1233_v50 = vsub.f32 %v3751_v45, %v1189_v36 }
 0x3c7   :  { %v1266_v4 = vmul.f32 1.442695, %v1241_v49 }
 0x3c8   :  { %v1250_v42 = vmul.f32 1.442695, %v1233_v50 }
 0x3c9   :  { %3250 = vpow2.f32 %v1266_v4  ;;  %v1210_v21 = vpop.xlane.xlu0 %1209  ;;  %v1195_v44 = vpop.xlane.xlu1 %1194 }
 0x3ca   :  { %3252 = vpow2.f32 %v1250_v42  ;;  %v1240_v46 = vsub.f32 %v3758_v22, %v1210_v21  ;;  %v1235_v52 = vsub.f32 %v3761_v51, %v1195_v44 }
 0x3cc   :  { %v1264_v53 = vmul.f32 1.442695, %v1240_v46  ;;  %v1254_v41 = vmul.f32 1.442695, %v1235_v52 }
 0x3cd   :  { %v1186_v54 = vpop.xlane.xlu0 %1185  ;;  %v1192_v48 = vpop.xlane.xlu1 %1191 }
 0x3ce   :  { %3254 = vpow2.f32 %v1264_v53  ;;  %v1232_v57 = vsub.f32 %v3764_v56, %v1186_v54  ;;  %v1234_v45 = vsub.f32 %v3771_v59, %v1192_v48 }
 0x3d0   :  { %v1248_v58 = vmul.f32 1.442695, %v1232_v57  ;;  %v1252_v51 = vmul.f32 1.442695, %v1234_v45 }
 0x3d1   :  { %v1219_v55 = vpop.xlane.xlu0 %1218  ;;  %v1201_v24 = vpop.xlane.xlu1 %1200 }
 0x3d2   :  { %3256 = vpow2.f32 %v1248_v58  ;;  %v1243_v63 = vsub.f32 %v3778_v20, %v1219_v55  ;;  %v1237_v3 = vsub.f32 %v3781_v61, %v1201_v24 }
 0x3d3   :  { %v3852_v1 = vpop.eup %3250  ;;  %3258 = vpow2.f32 %v1254_v41 }
 0x3d4   :  { %v3854_v22 = vpop.eup %3252  ;;  %v1270_v2 = vmul.f32 1.442695, %v1243_v63  ;;  %v1307_v56 = vsel %vm1183_vm7, %v3852_v1, 0.0  ;;  %v1258_v9 = vmul.f32 1.442695, %v1237_v3 }
 0x3d5   :  { %1308 = vadd.xlane.f32.xlu0 %v1307_v56  ;;  %v1216_v5 = vpop.xlane.xlu0 %1215  ;;  %v1198_v59 = vpop.xlane.xlu1 %1197  ;;  %v1283_v6 = vsel %vm1183_vm7, %v3854_v22, 0.0 }
 0x3d6   :  { %3260 = vpow2.f32 %v1270_v2  ;;  %v1242_v38 = vsub.f32 %v3784_v8, %v1216_v5  ;;  %1284 = vadd.xlane.f32.xlu1 %v1283_v6  ;;  %v1236_v61 = vsub.f32 %v3791_v12, %v1198_v59 }
 0x3d7   :  { %3262 = vpow2.f32 %v1252_v51 }
 0x3d8   :  { %v3862_v20 = vpop.eup %3254  ;;  %v1268_v10 = vmul.f32 1.442695, %v1242_v38  ;;  %v1256_v8 = vmul.f32 1.442695, %v1236_v61 }
 0x3d9   :  { %v1225_v11 = vpop.xlane.xlu0 %1224  ;;  %v1304_v13 = vsel %vm1183_vm7, %v3862_v20, 0.0  ;;  %v3919_v45 = vpop.permute.xlu1 %1814 }
 0x3da   :  { %3264 = vpow2.f32 %v1268_v10  ;;  %v1245_v14 = vsub.f32 %v3798_v15, %v1225_v11  ;;  %1305 = vadd.xlane.f32.xlu0 %v1304_v13 }
 0x3db   :  { %3266 = vpow2.f32 %v1258_v9 }
 0x3dc   :  { %v3868_v0 = vpop.eup %3256  ;;  %v1274_v17 = vmul.f32 1.442695, %v1245_v14 }
 0x3dd   :  { %v3870_v23 = vpop.eup %3258  ;;  %v1222_v26 = vpop.xlane.xlu0 %1221  ;;  %v1280_v28 = vsel %vm1183_vm7, %v3868_v0, 0.0 }
 0x3de   :  { %3268 = vpow2.f32 %v1274_v17  ;;  %v1244_v12 = vsub.f32 %v3803_v18, %v1222_v26  ;;  %1281 = vadd.xlane.f32.xlu1 %v1280_v28  ;;  %v1289_v34 = vsel %vm1183_vm7, %v3870_v23, 0.0  ;;  %v3921_v55 = vpop.permute.xlu1 %1890 }
 0x3df   :  { %3270 = vpow2.f32 %v1256_v8 }
 0x3e0   :  { %v3875_v27 = vpop.eup %3260  ;;  %v1272_v15 = vmul.f32 1.442695, %v1244_v12 }
 0x3e1   :  { %v1231_v33 = vpop.xlane.xlu0 %1230  ;;  %v1313_v29 = vsel %vm1183_vm7, %v3875_v27, 0.0  ;;  %v3881_v37 = vpop.eup %3262 }
 0x3e2   :  { %3272 = vpow2.f32 %v1272_v15  ;;  %v1247_v16 = vsub.f32 %v3808_v30, %v1231_v33  ;;  %1314 = vadd.xlane.f32.xlu0 %v1313_v29  ;;  %1290 = vadd.xlane.f32.xlu1 %v1289_v34  ;;  %v1286_v50 = vsel %vm1183_vm7, %v3881_v37, 0.0 }
 0x3e4   :  { %v3884_v18 = vpop.eup %3264  ;;  %v1278_v19 = vmul.f32 1.442695, %v1247_v16 }
 0x3e5   :  { %v1228_v49 = vpop.xlane.xlu0 %1227  ;;  %v1310_v36 = vsel %vm1183_vm7, %v3884_v18, 0.0  ;;  %v3890_v4 = vpop.eup %3266 }
 0x3e6   :  { %3274 = vpow2.f32 %v1278_v19  ;;  %v1246_v42 = vsub.f32 %v3813_v32, %v1228_v49  ;;  %1311 = vadd.xlane.f32.xlu0 %v1310_v36  ;;  %1287 = vadd.xlane.f32.xlu1 %v1286_v50  ;;  %v1295_v46 = vsel %vm1183_vm7, %v3890_v4, 0.0 }
 0x3e8   :  { %v3893_v30 = vpop.eup %3268  ;;  %v1276_v21 = vmul.f32 1.442695, %v1246_v42 }
 0x3e9   :  { %v1319_v44 = vsel %vm1183_vm7, %v3893_v30, 0.0  ;;  %v3899_v52 = vpop.eup %3270 }
 0x3ea   :  { %3276 = vpow2.f32 %v1276_v21  ;;  %1320 = vadd.xlane.f32.xlu0 %v1319_v44  ;;  %1296 = vadd.xlane.f32.xlu1 %v1295_v46  ;;  %v1292_v54 = vsel %vm1183_vm7, %v3899_v52, 0.0 }
 0x3ec   :  { %v3901_v53 = vpop.eup %3272 }
 0x3ed   :  { %v1316_v32 = vsel %vm1183_vm7, %v3901_v53, 0.0 }
 0x3ee   :  { %1317 = vadd.xlane.f32.xlu0 %v1316_v32  ;;  %1293 = vadd.xlane.f32.xlu1 %v1292_v54 }
 0x3f0   :  { %v3907_v48 = vpop.eup %3274 }
 0x3f1   :  { %v1325_v57 = vsel %vm1183_vm7, %v3907_v48, 0.0 }
 0x3f2   :  { %1326 = vadd.xlane.f32.xlu0 %v1325_v57 }
 0x3f4   :  { %v3915_v41 = vpop.eup %3276 }
 0x3f5   :  { %v1322_v58 = vsel %vm1183_vm7, %v3915_v41, 0.0 }
 0x3f6   :  { %1323 = vadd.xlane.f32.xlu0 %v1322_v58 }
 0x40e   :  { %v1207_v24 = vpop.xlane.xlu1 %1206 }
 0x40f   :  { %v1239_v63 = vsub.f32 %v3826_v35, %v1207_v24 }
 0x411   :  { %v1262_v51 = vmul.f32 1.442695, %v1239_v63 }
 0x412   :  { %v1204_v2 = vpop.xlane.xlu1 %1203 }
 0x413   :  { %3278 = vpow2.f32 %v1262_v51  ;;  %v1238_v3 = vsub.f32 %v3831_v39, %v1204_v2  ;;  %v1737_v39 = vpop.permute.xlu0 %1736 }
 0x415   :  { %v1260_v56 = vmul.f32 1.442695, %v1238_v3 }
 0x416   :  { %v3937_v35 = vpop.permute.xlu1 %2117 }
 0x417   :  { %3280 = vpow2.f32 %v1260_v56  ;;  %v3941_v10 = vpop.permute.xlu0 %2272 }
 0x41a   :  { %v3939_v9 = vpop.permute.xlu1 %2194 }
 0x41d   :  { %v3925_v5 = vpop.eup %3278 }
 0x41e   :  { %v1301_v59 = vsel %vm1183_vm7, %v3925_v5, 0.0  ;;  %v3943_v61 = vpop.permute.xlu1 %2348 }
 0x41f   :  { %1302 = vadd.xlane.f32.xlu1 %v1301_v59 }
 0x421   :  { %v3929_v6 = vpop.eup %3280 }
 0x422   :  { %v1298_v38 = vsel %vm1183_vm7, %v3929_v6, 0.0 }
 0x423   :  { %1299 = vadd.xlane.f32.xlu0 %v1298_v38 }
 0x430   :  { %2502 = vrot.lane.b32.xlu1 %v3714_v25, %s3433_s23 }
 0x439   :  { %2426 = vrot.lane.b32.xlu0 %v3708_v7, %s3433_s23 }
 0x462   :  { %v1309_v11 = vpop.xlane.xlu0 %1308 }
 0x463   :  { %v1285_v13 = vpop.xlane.xlu1 %1284 }
 0x464   :  { %3282 = vrcp.f32 %v1285_v13 }
 0x465   :  { %3284 = vrcp.f32 %v1309_v11 }
 0x467   :  { %v1306_v14 = vpop.xlane.xlu0 %1305 }
 0x468   :  { %3286 = vrcp.f32 %v1306_v14 }
 0x46b   :  { %v1282_v8 = vpop.xlane.xlu1 %1281 }
 0x46c   :  { %3288 = vrcp.f32 %v1282_v8 }
 0x46e   :  { %v3283_v17 = vpop.eup %3282 }
 0x46f   :  { %v1345_v26 = vmul.f32 %v3283_v17, %v3854_v22  ;;  %v1315_v28 = vpop.xlane.xlu0 %1314  ;;  %v1291_v12 = vpop.xlane.xlu1 %1290 }
 0x470   :  { %v3285_v15 = vpop.eup %3284 }
 0x471   :  { %3065 = vmatmul.mubr.msk.f32.vlgmr.msra.gmra.mrb[8].mxu0 %vm1183_vm7, %v1345_v26  ;;  %v1353_v33 = vmul.f32 %v3285_v15, %v3852_v1 }
 0x472   :  { %3068 = vmatpush3.msra.mxu0 %v3843_v47  ;;  %3069 = vmatprep.mubr.msk.f32.mxu0 %vm3434_vm8, %v3427_v62  ;;  %v3287_v16 = vpop.eup %3286 }
 0x473   :  { %v1312_v29 = vpop.xlane.xlu0 %1311  ;;  %v1288_v34 = vpop.xlane.xlu1 %1287  ;;  %3077 = vmatprep.subr.mxu0 %v3427_v62  ;;  %v1352_v47 = vmul.f32 %v3287_v16, %v3862_v20 }
 0x474   :  { %3290 = vrcp.f32 %v1312_v29 }
 0x475   :  { %3292 = vrcp.f32 %v1288_v34  ;;  %3070 = vmatmul.mubr.msk.f32.vlgmr.msra.gmra.mrb[10].mxu0 %vm1183_vm7, %v1353_v33 }
 0x476   :  { %v3289_v22 = vpop.eup %3288  ;;  %3294 = vrcp.f32 %v1315_v28  ;;  %3078 = vmatpush3.msra.mxu0 %v3712_v31  ;;  %3079 = vmatprep.mubr.msk.f32.mxu0 %vm3434_vm8, %v3427_v62 }
 0x477   :  { %v1344_v1 = vmul.f32 %v3289_v22, %v3868_v0  ;;  %3296 = vrcp.f32 %v1291_v12  ;;  %v1321_v19 = vpop.xlane.xlu0 %1320  ;;  %v1297_v49 = vpop.xlane.xlu1 %1296  ;;  %3087 = vmatprep.subr.mxu0 %v3427_v62 }
 0x479   :  { %3075 = vmatmul.mubr.msk.f32.vlgmr.msra.gmra.mrb[14].mxu1 %vm1183_vm7, %v1344_v1  ;;  %3080 = vmatmul.mubr.msk.f32.vlgmr.msra.gmra.mrb[12].mxu0 %vm1183_vm7, %v1352_v47 }
 0x47a   :  { %3083 = vmatpush3.msra.mxu1 %v3841_v43  ;;  %3088 = vmatpush3.msra.mxu0 %v1737_v39 }
 0x47b   :  { %v1318_v31 = vpop.xlane.xlu0 %1317  ;;  %v1294_v36 = vpop.xlane.xlu1 %1293  ;;  %3084 = vmatprep.mubr.msk.f32.mxu1 %vm3434_vm8, %v3427_v62  ;;  %3089 = vmatprep.mubr.msk.f32.mxu0 %vm3434_vm8, %v3427_v62 }
 0x47c   :  { %3298 = vrcp.f32 %v1318_v31  ;;  %3092 = vmatprep.subr.mxu1 %v3427_v62  ;;  %3097 = vmatprep.subr.mxu0 %v3427_v62 }
 0x47d   :  { %3300 = vrcp.f32 %v1294_v36 }
 0x47e   :  { %v3291_v20 = vpop.eup %3290  ;;  %3302 = vrcp.f32 %v1321_v19 }
 0x47f   :  { %v3293_v0 = vpop.eup %3292  ;;  %v1354_v43 = vmul.f32 %v3291_v20, %v3884_v18  ;;  %3304 = vrcp.f32 %v1297_v49  ;;  %v1327_v50 = vpop.xlane.xlu0 %1326 }
 0x480   :  { %v3295_v42 = vpop.eup %3294  ;;  %v1346_v21 = vmul.f32 %v3293_v0, %v3881_v37 }
 0x481   :  { %v3297_v44 = vpop.eup %3296  ;;  %3090 = vmatmul.mubr.msk.f32.vlgmr.msra.gmra.mrb[14].mxu0 %vm1183_vm7, %v1354_v43  ;;  %v1355_v46 = vmul.f32 %v3295_v42, %v3875_v27 }
 0x482   :  { %3085 = vmatmul.mubr.msk.f32.vlgmr.msra.gmra.mrb[16].mxu1 %vm1183_vm7, %v1346_v21  ;;  %3098 = vmatpush3.msra.mxu0 %v3921_v55  ;;  %v1347_v18 = vmul.f32 %v3297_v44, %v3870_v23  ;;  %v83_v21 = vld [vmem:[#allocation5 + $0x5] ss:$0 sm:$0xff] }
 0x483   :  { %3093 = vmatpush3.msra.mxu1 %v3919_v45  ;;  %v1324_v32 = vpop.xlane.xlu0 %1323  ;;  %3094 = vmatprep.mubr.msk.f32.mxu1 %vm3434_vm8, %v3427_v62 }
 0x484   :  { %3306 = vrcp.f32 %v1324_v32  ;;  %3099 = vmatprep.mubr.msk.f32.mxu0 %vm3434_vm8, %v3427_v62  ;;  %3102 = vmatprep.subr.mxu1 %v3427_v62 }
 0x485   :  { %3107 = vmatprep.subr.mxu0 %v3427_v62  ;;  %3100 = vmatmul.mubr.msk.f32.vlgmr.msra.gmra.mrb[16].mxu0 %vm1183_vm7, %v1355_v46  ;;  %3308 = vrcp.f32 %v1327_v50 }
 0x486   :  { %v3299_v37 = vpop.eup %3298  ;;  %3095 = vmatmul.mubr.msk.f32.vlgmr.msra.gmra.mrb[18].mxu1 %vm1183_vm7, %v1347_v18  ;;  %3108 = vmatpush3.msra.mxu0 %v3714_v25 }
 0x487   :  { %v3301_v27 = vpop.eup %3300  ;;  %v1356_v54 = vmul.f32 %v3299_v37, %v3901_v53  ;;  %3103 = vmatpush3.msra.mxu1 %v3708_v7  ;;  %3104 = vmatprep.mubr.msk.f32.mxu1 %vm3434_vm8, %v3427_v62 }
 0x488   :  { %v3303_v23 = vpop.eup %3302  ;;  %v1348_v57 = vmul.f32 %v3301_v27, %v3899_v52  ;;  %3109 = vmatprep.mubr.msk.f32.mxu0 %vm3434_vm8, %v3427_v62  ;;  %3112 = vmatprep.subr.mxu1 %v3427_v62 }
 0x489   :  { %v3305_v58 = vpop.eup %3304  ;;  %3117 = vmatprep.subr.mxu0 %v3427_v62  ;;  %3110 = vmatmul.mubr.msk.f32.vlgmr.msra.gmra.mrb[18].mxu0 %vm1183_vm7, %v1356_v54  ;;  %v1357_v7 = vmul.f32 %v3303_v23, %v3893_v30 }
 0x48a   :  { %3105 = vmatmul.mubr.msk.f32.vlgmr.msra.gmra.mrb[20].mxu1 %vm1183_vm7, %v1348_v57  ;;  %3118 = vmatpush3.msra.mxu0 %v3939_v9  ;;  %v1349_v25 = vmul.f32 %v3305_v58, %v3890_v4 }
 0x48b   :  { %3113 = vmatpush3.msra.mxu1 %v3937_v35  ;;  %3114 = vmatprep.mubr.msk.f32.mxu1 %vm3434_vm8, %v3427_v62 }
 0x48c   :  { %3119 = vmatprep.mubr.msk.f32.mxu0 %vm3434_vm8, %v3427_v62  ;;  %3122 = vmatprep.subr.mxu1 %v3427_v62 }
 0x48d   :  { %3127 = vmatprep.subr.mxu0 %v3427_v62  ;;  %3120 = vmatmul.mubr.msk.f32.vlgmr.msra.gmra.mrb[20].mxu0 %vm1183_vm7, %v1357_v7 }
 0x48e   :  { %v3307_v52 = vpop.eup %3306  ;;  %3115 = vmatmul.mubr.msk.f32.vlgmr.msra.gmra.mrb[22].mxu1 %vm1183_vm7, %v1349_v25  ;;  %3128 = vmatpush3.msra.mxu0 %v3943_v61 }
 0x48f   :  { %v1358_v30 = vmul.f32 %v3307_v52, %v3915_v41  ;;  %3123 = vmatpush3.msra.mxu1 %v3941_v10  ;;  %3129 = vmatprep.mubr.msk.f32.mxu0 %vm3434_vm8, %v3427_v62  ;;  %v3309_v53 = vpop.eup %3308 }
 0x490   :  { %3137 = vmatprep.subr.mxu0 %v3427_v62  ;;  %3124 = vmatprep.mubr.msk.f32.mxu1 %vm3434_vm8, %v3427_v62  ;;  %v1359_v41 = vmul.f32 %v3309_v53, %v3907_v48 }
 0x491   :  { %3130 = vmatmul.mubr.msk.f32.vlgmr.msra.gmra.mrb[22].mxu0 %vm1183_vm7, %v1358_v30  ;;  %3132 = vmatprep.subr.mxu1 %v3427_v62 }
 0x492   :  { %3139 = vmatprep.mubr.msk.f32.mxu0 %vm3434_vm8, %v3427_v62 }
 0x4ac   :  { %v1303_v4 = vpop.xlane.xlu1 %1302 }
 0x4b0   :  { %v1300_v45 = vpop.xlane.xlu0 %1299  ;;  %v2503_v55 = vpop.permute.xlu1 %2502 }
 0x4b1   :  { %3310 = vrcp.f32 %v1300_v45  ;;  %3138 = vmatpush3.msra.mxu0 %v2503_v55 }
 0x4b2   :  { %3140 = vmatmul.mubr.msk.f32.vlgmr.msra.gmra.mrb[24].mxu0 %vm1183_vm7, %v1359_v41  ;;  %3312 = vrcp.f32 %v1303_v4 }
 0x4b4   :  { %v2427_v2 = vpop.permute.xlu0 %2426 }
 0x4bb   :  { %v3311_v24 = vpop.eup %3310 }
 0x4bc   :  { %v1350_v63 = vmul.f32 %v3311_v24, %v3929_v6  ;;  %v3313_v51 = vpop.eup %3312 }
 0x4bd   :  { %v1351_v48 = vmul.f32 %v3313_v51, %v3925_v5 }
 0x4be   :  { %3125 = vmatmul.mubr.msk.f32.vlgmr.msra.gmra.mrb[24].mxu1 %vm1183_vm7, %v1350_v63 }
 0x4bf   :  { %3133 = vmatpush3.msra.mxu1 %v2427_v2  ;;  %3134 = vmatprep.mubr.msk.f32.mxu1 %vm3434_vm8, %v3427_v62 }
 0x4c2   :  { %3135 = vmatmul.mubr.msk.f32.vlgmr.msra.gmra.mrb[26].mxu1 %vm1183_vm7, %v1351_v48 }
 0x544   :  { %v1433_v3 = vpop.f32.mrb[8].mxu0 }
 0x545   :  { %v3066_v56 = vpop.f32.mrb[9].mxu0 }
 0x546   :  { %v103_v56 = vld [vmem:[#allocation7 + $0x90] sm:$0xff] }
 0x548   :  { %v1510_v59 = vpop.f32.mrb[10].mxu0 }
 0x549   :  { %v3071_v38 = vpop.f32.mrb[11].mxu0 }
 0x54a   :  { %v105_v38 = vld [vmem:[#allocation7 + $0xb0] sm:$0xff] }
 0x54c   :  { %v1583_v35 = vpop.f32.mrb[14].mxu1  ;;  %v1656_v39 = vpop.f32.mrb[12].mxu0 }
 0x54d   :  { %v1584_v9 = vadd.f32 %v1583_v35, %v1433_v3  ;;  %v1657_v6 = vadd.f32 %v1656_v39, %v1510_v59  ;;  %v3076_v10 = vpop.f32.mrb[15].mxu1  ;;  %v3081_v61 = vpop.f32.mrb[13].mxu0  ;;  %v102_v3 = vld [vmem:[#allocation7 + $0x80] sm:$0xff] }
 0x54e   :  { %v104_v59 = vld [vmem:[#allocation7 + $0xa0] sm:$0xff]  ;;  %v109_v61 = vld [vmem:[#allocation7 + $0xf0] sm:$0xff] }
 0x54f   :  { %v3192_v35 = vpack.c.bf16 %v105_v38, %v104_v59  ;;  %v106_v39 = vld [vmem:[#allocation7 + $0xc0] sm:$0xff]  ;;  %v88_v59 = vld [vmem:[#allocation5 + $0x12] ss:$0 sm:$0xff] }
 0x554   :  { %v1808_v11 = vpop.f32.mrb[14].mxu0 }
 0x555   :  { %v1732_v13 = vpop.f32.mrb[16].mxu1  ;;  %v1813_v14 = vadd.f32 %v1808_v11, %v1657_v6  ;;  %v3091_v8 = vpop.f32.mrb[15].mxu0  ;;  %v108_v6 = vld [vmem:[#allocation7 + $0xe0] sm:$0xff] }
 0x556   :  { %v1812_v17 = vadd.f32 %v1732_v13, %v1584_v9  ;;  %v3086_v62 = vpop.f32.mrb[17].mxu1  ;;  %v107_v9 = vld [vmem:[#allocation7 + $0xd0] sm:$0xff]  ;;  %v3200_v11 = vpack.c.bf16 %v109_v61, %v108_v6  ;;  %v110_v13 = vld [vmem:[#allocation7 + $0x100] sm:$0xff] }
 0x557   :  { %v3196_v10 = vpack.c.bf16 %v107_v9, %v106_v39  ;;  %v89_v39 = vld [vmem:[#allocation5 + $0x13] ss:$0 sm:$0xff] }
 0x558   :  { %v1962_v26 = vpop.f32.mrb[16].mxu0 }
 0x559   :  { %v1886_v5 = vpop.f32.mrb[18].mxu1  ;;  %v1967_v28 = vadd.f32 %v1962_v26, %v1813_v14  ;;  %v3101_v12 = vpop.f32.mrb[17].mxu0  ;;  %v111_v14 = vld [vmem:[#allocation7 + $0x110] sm:$0xff]  ;;  %3197 = vmatprep.subr.bf16.mxu0 %v3196_v10 }
 0x55a   :  { %v1966_v15 = vadd.f32 %v1886_v5, %v1812_v17  ;;  %v3096_v33 = vpop.f32.mrb[19].mxu1  ;;  %3199 = vmatpush3.bf16.msra.mxu0 %v3196_v10  ;;  %v3204_v8 = vpack.c.bf16 %v111_v14, %v110_v13 }
 0x55b   :  { %3201 = vmatprep.subr.bf16.mxu0 %v3200_v11  ;;  %v84_v33 = vld [vmem:[#allocation5 + $0x6] ss:$0 sm:$0xff] }
 0x55c   :  { %v2110_v29 = vpop.f32.mrb[18].mxu0 }
 0x55d   :  { %v2037_v34 = vpop.f32.mrb[20].mxu1  ;;  %v2115_v16 = vadd.f32 %v2110_v29, %v1967_v28  ;;  %v3111_v22 = vpop.f32.mrb[19].mxu0 }
 0x55e   :  { %v2114_v47 = vadd.f32 %v2037_v34, %v1966_v15  ;;  %v3106_v1 = vpop.f32.mrb[21].mxu1  ;;  %3203 = vmatpush3.bf16.msra.mxu0 %v3200_v11  ;;  %v85_v34 = vld [vmem:[#allocation5 + $0x7] ss:$0 sm:$0xff] }
 0x55f   :  { %3205 = vmatprep.subr.bf16.mxu0 %v3204_v8 }
 0x560   :  { %v2266_v19 = vpop.f32.mrb[20].mxu0 }
 0x561   :  { %v2189_v49 = vpop.f32.mrb[22].mxu1  ;;  %v2271_v31 = vadd.f32 %v2266_v19, %v2115_v16  ;;  %v3121_v36 = vpop.f32.mrb[21].mxu0 }
 0x562   :  { %v2270_v20 = vadd.f32 %v2189_v49, %v2114_v47  ;;  %v3116_v0 = vpop.f32.mrb[23].mxu1  ;;  %3207 = vmatpush3.bf16.msra.mxu0 %v3204_v8  ;;  %v113_v36 = vld [vmem:[#allocation7 + $0x130] sm:$0xff] }
 0x563   :  { %v86_v0 = vld [vmem:[#allocation5 + $0x10] ss:$0 sm:$0xff] }
 0x564   :  { %v2420_v43 = vpop.f32.mrb[22].mxu0 }
 0x565   :  { %v2425_v50 = vadd.f32 %v2420_v43, %v2271_v31  ;;  %v3131_v42 = vpop.f32.mrb[23].mxu0  ;;  %v112_v31 = vld [vmem:[#allocation7 + $0x120] sm:$0xff] }
 0x585   :  { %v2574_v44 = vpop.f32.mrb[24].mxu0 }
 0x586   :  { %v2579_v46 = vadd.f32 %v2574_v44, %v2425_v50  ;;  %v3141_v32 = vpop.f32.mrb[25].mxu0 }
 0x587   :  { %v87_v32 = vld [vmem:[#allocation5 + $0x11] ss:$0 sm:$0xff] }
 0x588   :  { %v2581_v18 = vadd.f32 %v2579_v46, %v83_v21 }
 0x58a   :  { %v2583_v37 = vadd.f32 %v2581_v18, %v3589_v60 }
 0x58c   :  { %v2587_v27 = vsel %vm549_vm11, %v2583_v37, 0.0 }
 0x58d   :  { %2588 = vadd.xlane.f32.xlu1 %v2587_v27 }
 0x591   :  { %v2344_v54 = vpop.f32.mrb[24].mxu1 }
 0x592   :  { %v2424_v23 = vadd.f32 %v2344_v54, %v2270_v20  ;;  %v3126_v57 = vpop.f32.mrb[25].mxu1  ;;  %v3208_v20 = vpack.c.bf16 %v113_v36, %v112_v31 }
 0x594   :  { %3209 = vmatprep.subr.bf16.mxu0 %v3208_v20 }
 0x595   :  { %v2498_v58 = vpop.f32.mrb[26].mxu1  ;;  %3211 = vmatpush3.bf16.msra.mxu0 %v3208_v20 }
 0x596   :  { %v2578_v7 = vadd.f32 %v2498_v58, %v2424_v23  ;;  %v3136_v25 = vpop.f32.mrb[27].mxu1 }
 0x598   :  { %v2580_v52 = vadd.f32 %v2578_v7, %v83_v21 }
 0x59a   :  { %v2582_v30 = vadd.f32 %v2580_v52, %v3580_v40  ;;  %v3188_v40 = vpack.c.bf16 %v103_v56, %v102_v3 }
 0x59c   :  { %v2584_v4 = vsel %vm549_vm11, %v2582_v30, 0.0  ;;  %3189 = vmatprep.subr.bf16.mxu1 %v3188_v40 }
 0x59d   :  { %2585 = vadd.xlane.f32.xlu0 %v2584_v4  ;;  %3191 = vmatpush3.bf16.msra.mxu1 %v3188_v40 }
 0x59e   :  { %3193 = vmatprep.subr.bf16.mxu1 %v3192_v35 }
 0x5a1   :  { %3195 = vmatpush3.bf16.msra.mxu1 %v3192_v35 }
 0x61a   :  { %v2589_v53 = vpop.xlane.xlu1 %2588 }
 0x61b   :  { %v2592_v41 = vmul.f32 0.03125, %v2589_v53 }
 0x61d   :  { %v2594_v60 = vsub.f32 %v2583_v37, %v2592_v41 }
 0x61f   :  { %v2596_v2 = vmul.f32 %v2594_v60, %v2594_v60 }
 0x621   :  { %v2600_v48 = vsel %vm549_vm11, %v2596_v2, 0.0 }
 0x62a   :  { %v2586_v45 = vpop.xlane.xlu0 %2585 }
 0x62b   :  { %v2591_v55 = vmul.f32 0.03125, %v2586_v45 }
 0x62d   :  { %v2593_v24 = vsub.f32 %v2582_v30, %v2591_v55 }
 0x62f   :  { %v2595_v63 = vmul.f32 %v2593_v24, %v2593_v24 }
 0x631   :  { %v2597_v51 = vsel %vm549_vm11, %v2595_v63, 0.0 }
 0x632   :  { %2598 = vadd.xlane.f32.xlu0 %v2597_v51 }
 0x636   :  { %2601 = vadd.xlane.f32.xlu0 %v2600_v48 }
 0x6bf   :  { %v2599_v17 = vpop.xlane.xlu0 %2598 }
 0x6c0   :  { %v2603_v62 = vmul.f32 0.03125, %v2599_v17 }
 0x6c2   :  { %v2605_v26 = vadd.f32 1e-05, %v2603_v62 }
 0x6c3   :  { %v2602_v5 = vpop.xlane.xlu0 %2601 }
 0x6c4   :  { %3314 = vrsqrt.f32 %v2605_v26  ;;  %v2604_v28 = vmul.f32 0.03125, %v2602_v5 }
 0x6c6   :  { %v2606_v12 = vadd.f32 1e-05, %v2604_v28 }
 0x6c8   :  { %3316 = vrsqrt.f32 %v2606_v12 }
 0x6ce   :  { %v3315_v15 = vpop.eup %3314 }
 0x6cf   :  { %v2609_v29 = vmul.f32 %v3315_v15, %v2593_v24 }
 0x6d1   :  { %v2611_v16 = vmul.f32 %v2609_v29, %v84_v33 }
 0x6d2   :  { %v3317_v22 = vpop.eup %3316 }
 0x6d3   :  { %v2610_v47 = vmul.f32 %v3317_v22, %v2594_v60  ;;  %v2613_v1 = vadd.f32 %v2611_v16, %v85_v34 }
 0x6d5   :  { %v2612_v19 = vmul.f32 %v2610_v47, %v84_v33  ;;  %3150 = vmatprep.mubr.msk.f32.mxu1 %vm549_vm11, %v2613_v1 }
 0x6d7   :  { %v2614_v49 = vadd.f32 %v2612_v19, %v85_v34 }
 0x6d9   :  { %3151 = vmatmul.mubr.msk.f32.vlgmr.msra.gmra.mrb[28].mxu1 %vm549_vm11, %v2614_v49 }
 0x7ac   :  { %v3152_v43 = vpop.f32.mrb[28].mxu1 }
 0x7ad   :  { %v2693_v50 = vadd.f32 %v3152_v43, %v86_v0  ;;  %v2687_v42 = vpop.f32.mrb[29].mxu1 }
 0x7ae   :  { %v2688_v21 = vadd.f32 %v2687_v42, %v86_v0 }
 0x7af   :  { %v2697_v46 = vmax.f32 %v2693_v50, 0.0 }
 0x7b0   :  { %v2696_v44 = vmax.f32 %v2688_v21, 0.0 }
 0x7b2   :  { %3169 = vmatprep.mubr.msk.f32.mxu0 %vm2698_vm9, %v2696_v44 }
 0x7b3   :  { %3170 = vmatmul.mubr.msk.f32.vlgmr.msra.gmra.mrb[26].mxu0 %vm2698_vm9, %v2697_v46 }
 0x886   :  { %v3171_v18 = vpop.f32.mrb[26].mxu0 }
 0x887   :  { %v2777_v37 = vadd.f32 %v3171_v18, %v87_v32  ;;  %v2771_v27 = vpop.f32.mrb[27].mxu0 }
 0x888   :  { %v2772_v54 = vadd.f32 %v2771_v27, %v87_v32 }
 0x889   :  { %v2781_v23 = vadd.f32 %v2777_v37, %v2614_v49 }
 0x88a   :  { %v2780_v57 = vadd.f32 %v2772_v54, %v2613_v1 }
 0x88b   :  { %v2785_v58 = vsel %vm549_vm11, %v2781_v23, 0.0 }
 0x88c   :  { %2786 = vadd.xlane.f32.xlu0 %v2785_v58  ;;  %v2782_v7 = vsel %vm549_vm11, %v2780_v57, 0.0 }
 0x88d   :  { %2783 = vadd.xlane.f32.xlu1 %v2782_v7 }
 0x919   :  { %v2787_v25 = vpop.xlane.xlu0 %2786 }
 0x91a   :  { %v2789_v52 = vmul.f32 0.03125, %v2787_v25  ;;  %v2784_v30 = vpop.xlane.xlu1 %2783 }
 0x91b   :  { %v2788_v4 = vmul.f32 0.03125, %v2784_v30 }
 0x91c   :  { %v2791_v53 = vsub.f32 %v2781_v23, %v2789_v52 }
 0x91d   :  { %v2790_v41 = vsub.f32 %v2780_v57, %v2788_v4 }
 0x91e   :  { %v2793_v45 = vmul.f32 %v2791_v53, %v2791_v53 }
 0x91f   :  { %v2792_v55 = vmul.f32 %v2790_v41, %v2790_v41 }
 0x920   :  { %v2797_v60 = vsel %vm549_vm11, %v2793_v45, 0.0 }
 0x921   :  { %2798 = vadd.xlane.f32.xlu0 %v2797_v60  ;;  %v2794_v24 = vsel %vm549_vm11, %v2792_v55, 0.0 }
 0x922   :  { %2795 = vadd.xlane.f32.xlu1 %v2794_v24 }
 0x9ae   :  { %v2799_v63 = vpop.xlane.xlu0 %2798 }
 0x9af   :  { %v2801_v51 = vmul.f32 0.03125, %v2799_v63  ;;  %v2796_v2 = vpop.xlane.xlu1 %2795 }
 0x9b0   :  { %v2800_v48 = vmul.f32 0.03125, %v2796_v2 }
 0x9b1   :  { %v2803_v3 = vadd.f32 1e-05, %v2801_v51 }
 0x9b2   :  { %v2802_v56 = vadd.f32 1e-05, %v2800_v48 }
 0x9b3   :  { %3318 = vrsqrt.f32 %v2803_v3 }
 0x9b4   :  { %3320 = vrsqrt.f32 %v2802_v56 }
 0x9bd   :  { %v3319_v40 = vpop.eup %3318 }
 0x9be   :  { %v3321_v38 = vpop.eup %3320  ;;  %v2807_v35 = vmul.f32 %v3319_v40, %v2791_v53 }
 0x9bf   :  { %v2806_v9 = vmul.f32 %v3321_v38, %v2790_v41 }
 0x9c0   :  { %v2809_v6 = vmul.f32 %v2807_v35, %v88_v59 }
 0x9c1   :  { %v2808_v10 = vmul.f32 %v2806_v9, %v88_v59 }
 0x9c2   :  { %v2811_v61 = vadd.f32 %v2809_v6, %v89_v39 }
 0x9c3   :  { %v2810_v11 = vadd.f32 %v2808_v10, %v89_v39 }
 0x9c4   :  { %v2840_v13 = vrot.slane %v2811_v61, 4  ;;  %v2830_v17 = vrot.slane %v2811_v61, 2  ;;  %v2824_v62 = vrot.slane %v2811_v61, 1  ;;  %v2836_v26 = vrot.slane %v2811_v61, 3 }
 0x9c5   :  { %v2839_v14 = vrot.slane %v2810_v11, 5  ;;  %v2818_v8 = vrot.slane %v2810_v11, 1  ;;  %v2829_v12 = vrot.slane %v2810_v11, 3  ;;  %v2823_v15 = vrot.slane %v2810_v11, 2 }
 0x9c6   :  { %v2835_v33 = vrot.slane %v2810_v11, 4  ;;  %v2814_v29 = vrot.slane %v2811_v61, 7  ;;  %v2845_v1 = vrot.slane %v2810_v11, 6  ;;  %v2846_v19 = vrot.slane %v2811_v61, 5 }
 0x9c7   :  { %v2841_v5 = vsel %vm2815_vm10, %v2840_v13, %v2839_v14  ;;  %v2819_v28 = vsel %vm2815_vm10, %v2811_v61, %v2818_v8  ;;  %v2831_v22 = vsel %vm2815_vm10, %v2830_v17, %v2829_v12  ;;  %v2825_v47 = vsel %vm2815_vm10, %v2824_v62, %v2823_v15 }
 0x9c8   :  { %2842 = vrot.lane.b32.xlu0 %v2841_v5, %s3433_s23  ;;  %2820 = vrot.lane.b32.xlu1 %v2819_v28, %s3433_s23  ;;  %v2837_v34 = vsel %vm2815_vm10, %v2836_v26, %v2835_v33  ;;  %v2816_v16 = vsel %vm2815_vm10, %v2814_v29, %v2810_v11  ;;  %v2847_v49 = vsel %vm2815_vm10, %v2846_v19, %v2845_v1  ;;  %v2851_v31 = vrot.slane %v2810_v11, 7 }
 0x9c9   :  { %v2852_v36 = vrot.slane %v2811_v61, 6 }
 0x9cb   :  { %v2853_v20 = vsel %vm2815_vm10, %v2852_v36, %v2851_v31 }
 0x9cc   :  { %2832 = vrot.lane.b32.xlu0 %v2831_v22, %s3430_s2  ;;  %2826 = vrot.lane.b32.xlu1 %v2825_v47, %s3432_s22 }
 0x9d0   :  { %2848 = vrot.lane.b32.xlu1 %v2847_v49, %s3432_s22 }
 0x9d4   :  { %2854 = vrot.lane.b32.xlu1 %v2853_v20, %s3430_s2 }
 0xa3a   :  { %v2821_v0 = vpop.permute.xlu1 %2820  ;;  %v2843_v43 = vpop.permute.xlu0 %2842 }
 0xa3b   :  { %v2857_v21 = vsel %vm549_vm11, %v2816_v16, %v2821_v0  ;;  %v2861_v32 = vsel %vm549_vm11, %v2837_v34, %v2843_v43 }
 0xa3e   :  { %v2827_v50 = vpop.permute.xlu1 %2826  ;;  %v2833_v44 = vpop.permute.xlu0 %2832 }
 0xa3f   :  { %v2858_v46 = vsel %vm2698_vm9, %v2857_v21, %v2827_v50 }
 0xa40   :  { %v2860_v27 = vsel %vm2859_vm12, %v2858_v46, %v2833_v44 }
 0xa42   :  { %v2849_v42 = vpop.permute.xlu1 %2848 }
 0xa43   :  { %v2862_v18 = vsel %vm2698_vm9, %v2861_v32, %v2849_v42 }
 0xa46   :  { %v2855_v37 = vpop.permute.xlu1 %2854 }
 0xa47   :  { %v2863_v54 = vsel %vm2859_vm12, %v2862_v18, %v2855_v37 }
 0xa48   :  { %v2866_v23 = vcombine.low %v2860_v27, %v2863_v54 }
 0xa4a   :  { %2950 = vst.sshfl [vmem:[#allocation8] sm:$0x33 pattern:$0x76325410] %v2866_v23 }
 0xa4b   :  { %3399 = shalt.err (!%p3396_p0)
}
 0xa4c   :  { %s3400_s29 = scalar_lea.hbm %s4075_s3, 64 }
 0xa4d   :  { %p3401_p1 = scmp.ne.s32.totalorder %s4075_s3, %s3400_s29  ;;  %p3404_p2 = scmp.lt.u32.totalorder %s3400_s29, %s4075_s3 }
 0xa4f   :  { %p3406_p3 = pnand %p3404_p2, %p3401_p1 }
 0xa51   :  { %3409 = shalt.err (!%p3406_p3)
}
 0xa52   :  { %2885 = dma.vmem_to_hbm [thread:$0]  %s2883_s25, 64, %s4075_s3, [#allocation4]  }
 0xa53   :  { %3414 = dma.done.wait [#allocation4], 64  }
 0xa54   :  { %3415 = vsyncadd [#allocation4], 4294967232 }
 0xa55   :  { %2889 = vsyncpa [#allocation3], 1 }
 0xa56   :  { %2890 = vsyncpa [#allocation6], 1 }
 0xa57   :  { %2891 = vsyncpa [#allocation4], 1 }

</bundles_post_ra>
